<compile_context>
chip_gen: v6e
topology: v6e:2x2x1
jax: 0.10.0
libtpu: 0.0.40
codegen_flags: <defaults>
</compile_context>

<pallas_src>
import functools
import numpy as np
import jax
import jax.numpy as jnp
from jax.experimental import pallas as pl
from jax.experimental.pallas import tpu as pltpu

HIGHEST = jax.lax.Precision.HIGHEST   # used only in the pure-JAX reference


# ----------------------------------------------------------------------------
# Fused Pallas kernel: whole WRN forward for B sublane-packed images per step
# ----------------------------------------------------------------------------
def wrn_fused_kernel(x_ref, m_ref, bn_ref, r2_ref, r3_ref, pool_ref,
                     head_ref, bias_ref, out_ref, *, H1, H2, H3):

    def bn_relu(h, i):
        s = bn_ref[2 * i:2 * i + 1, :]            # (1, 64) f32
        t = bn_ref[2 * i + 1:2 * i + 2, :]
        return jnp.maximum(h * s + t, 0.0)

    def cat3(x, h_img):
        # x: (B*h_img, W*C).  Build [in[h-1] | in[h] | in[h+1]] along lanes.
        # Rolls go to the XLU, boundary masks to the VPU; no MXU involved.
        n = x.shape[0]
        row = jax.lax.broadcasted_iota(jnp.int32, (n, 1), 0)
        down = jnp.where(row % h_img != 0,
                         pltpu.roll(x, 1, 0), 0.0)            # in[h-1]
        up = jnp.where(row % h_img != h_img - 1,
                       pltpu.roll(x, n - 1, 0), 0.0)          # in[h+1]
        return jnp.concatenate([down, x, up], axis=1)         # (n, 3*W*C)

    def conv(x_cat, i):
        # One fused MXU matmul per conv (all 3 vertical taps stacked along the
        # contraction dim); bf16 operands, f32 accumulation.
        return jnp.dot(x_cat.astype(jnp.bfloat16), m_ref[i],
                       preferred_element_type=jnp.float32)

    def row_select(r, x_cat):
        # stride-2 vertical subsampling (0/1 selection matrix).
        return jnp.dot(r, x_cat, preferred_element_type=jnp.float32)

    x = x_ref[...]                                             # (B*H1, 64)

    # stem conv: 3x3, stride 1, pad 1 (input channel padded 3 -> 4 with zeros)
    h0 = conv(cat3(x, H1), 0)                                  # (B*H1, 64)

    # block1: BasicBlock(4 -> 4, stride 1), identity residual
    a = bn_relu(h0, 0)
    o = bn_relu(conv(cat3(a, H1), 1), 1)
    x1 = h0 + conv(cat3(o, H1), 2)                             # (B*H1, 64)

    # block2: BasicBlock(4 -> 8, stride 2), conv shortcut on BN-ReLU'd input
    a = bn_relu(x1, 2)
    a_sel = row_select(r2_ref[...], cat3(a, H1))               # (B*H2, 192)
    o = bn_relu(conv(a_sel, 3), 3)                             # (B*H2, 64)
    sc = conv(a_sel, 4)                                        # 1x1 shortcut
    x2 = sc + conv(cat3(o, H2), 5)                             # (B*H2, 64)

    # block3: BasicBlock(8 -> 16, stride 2)
    a = bn_relu(x2, 4)
    a_sel = row_select(r3_ref[...], cat3(a, H2))               # (B*H3, 192)
    o = bn_relu(conv(a_sel, 6), 5)                             # (B*H3, 64)
    sc = conv(a_sel, 7)
    x3 = sc + conv(cat3(o, H3), 8)                             # (B*H3, 64)

    # head: BN + ReLU + global avg pool + Linear.
    # Mean over H folded into pool_ref, mean over W (+ FC weights) into head_ref.
    h = bn_relu(x3, 6)                                         # (B*H3, 64)
    pooled = jnp.dot(pool_ref[...], h,
                     preferred_element_type=jnp.float32)       # (B, 64)
    logits = jnp.dot(pooled.astype(jnp.bfloat16), head_ref[...],
                     preferred_element_type=jnp.float32)       # (B, 128)
    out_ref[...] = logits + bias_ref[...]


# ----------------------------------------------------------------------------
# Host-side (numpy) weight preprocessing -> a few packed operands
# ----------------------------------------------------------------------------
def _conv3x3_cat_matrix(w, w_in, stride, c_in_pad=None):
    """3x3 conv (pad 1) as one (3*Win*Cin, Wout*Cout) matrix acting on
    x_cat = [in[h-1] | in[h] | in[h+1]] slabs with lane layout (w, c)."""
    w = np.asarray(w, np.float32)
    c_out, c_in = w.shape[:2]
    if c_in_pad is not None and c_in_pad > c_in:
        w = np.concatenate(
            [w, np.zeros((c_out, c_in_pad - c_in, 3, 3), np.float32)], axis=1)
        c_in = c_in_pad
    w_out = (w_in + 2 - 3) // stride + 1
    m = np.zeros((3, w_in, c_in, w_out, c_out), np.float32)
    for kh in range(3):
        for wo in range(w_out):
            for kw in range(3):
                wi = wo * stride + kw - 1
                if 0 <= wi < w_in:
                    m[kh, wi, :, wo, :] = w[:, :, kh, kw].T
    return m.reshape(3 * w_in * c_in, w_out * c_out)


def _conv1x1_center_matrix(w, w_in, stride):
    """1x1 shortcut conv (stride s, pad 0) embedded in the CENTER chunk of the
    same (3*Win*Cin, Wout*Cout) contraction used by the 3x3 convs."""
    w = np.asarray(w, np.float32)
    c_out, c_in = w.shape[:2]
    w_out = (w_in - 1) // stride + 1
    mc = np.zeros((w_in, c_in, w_out, c_out), np.float32)
    for wo in range(w_out):
        mc[wo * stride, :, wo, :] = w[:, :, 0, 0].T
    m = np.zeros((3 * w_in * c_in, w_out * c_out), np.float32)
    m[w_in * c_in:2 * w_in * c_in, :] = mc.reshape(w_in * c_in, w_out * c_out)
    return m


def _tiled_bn(bn, w_spatial):
    scale, shift = (np.asarray(v, np.float32) for v in bn)
    return np.tile(scale, w_spatial), np.tile(shift, w_spatial)


def _row_subsample(h_in, stride, batch):
    r = np.zeros((h_in // stride, h_in), np.float32)
    r[np.arange(h_in // stride), np.arange(0, h_in, stride)] = 1.0
    return np.kron(np.eye(batch, dtype=np.float32), r)


def prepare_weights(params, *, images_per_step, H=16, W=16, lane_pad=128):
    """Run ONCE at model init (host-side numpy). Returns packed device arrays."""
    B = images_per_step
    H2, W2, H3, W3 = H // 2, W // 2, H // 4, W // 4
    c_stem_pad = params['conv1'].shape[0]        # pad stem Cin 3 -> 4
    ncls = params['fc_w'].shape[0]
    b1, b2, b3 = params['b1'], params['b2'], params['b3']

    m_list = [
        _conv3x3_cat_matrix(params['conv1'], W, 1, c_in_pad=c_stem_pad),  # 0
        _conv3x3_cat_matrix(b1['conv1'], W, 1),                           # 1
        _conv3x3_cat_matrix(b1['conv2'], W, 1),                           # 2
        _conv3x3_cat_matrix(b2['conv1'], W, 2),                           # 3
        _conv1x1_center_matrix(b2['short'], W, 2),                        # 4
        _conv3x3_cat_matrix(b2['conv2'], W2, 1),                          # 5
        _conv3x3_cat_matrix(b3['conv1'], W2, 2),                          # 6
        _conv1x1_center_matrix(b3['short'], W2, 2),                       # 7
        _conv3x3_cat_matrix(b3['conv2'], W3, 1),                          # 8
    ]
    shapes = {m.shape for m in m_list}
    assert len(shapes) == 1, f"expected uniform conv-matrix shapes, got {shapes}"
    m_all = np.stack(m_list, axis=0)                          # (9, 192, 64)

    bn_rows = []
    for bn, w_sp in [(b1['bn1'], W), (b1['bn2'], W), (b2['bn1'], W),
                     (b2['bn2'], W2), (b3['bn1'], W2), (b3['bn2'], W3),
                     (params['bn_final'], W3)]:
        s, t = _tiled_bn(bn, w_sp)
        bn_rows += [s, t]
    bn_all = np.stack(bn_rows, axis=0)                        # (14, 64)

    r2 = _row_subsample(H, 2, B)                              # (B*H2, B*H)
    r3 = _row_subsample(H2, 2, B)                             # (B*H3, B*H2)
    pool = np.kron(np.eye(B, dtype=np.float32),
                   np.full((1, H3), 1.0 / H3, np.float32))    # (B, B*H3)

    fc_w = np.asarray(params['fc_w'], np.float32)             # (ncls, C3)
    m_head = np.tile(fc_w.T, (W3, 1)) / W3                    # (W3*C3, ncls)
    m_head = np.pad(m_head, ((0, 0), (0, lane_pad - ncls)))   # lane-dense output
    fc_b = np.pad(np.asarray(params['fc_b'], np.float32)[None, :],
                  ((0, 0), (0, lane_pad - ncls)))

    return {
        'm_all': jnp.asarray(m_all, jnp.bfloat16),
        'bn_all': jnp.asarray(bn_all, jnp.float32),
        'r2': jnp.asarray(r2, jnp.float32),
        'r3': jnp.asarray(r3, jnp.float32),
        'pool': jnp.asarray(pool, jnp.float32),
        'm_head': jnp.asarray(m_head, jnp.bfloat16),
        'fc_b': jnp.asarray(fc_b, jnp.float32),
    }


# ----------------------------------------------------------------------------
# Forward: one fused pallas_call over grid=(N // images_per_step,)
# ----------------------------------------------------------------------------
@functools.partial(jax.jit, static_argnames=('images_per_step', 'num_cls'))
def pallas_forward(x_nchw, packed, *, images_per_step, num_cls):
    N, c_in, H, W = x_nchw.shape
    B = images_per_step
    assert N % B == 0, "batch must be divisible by images_per_step"
    steps = N // B
    H2, H3 = H // 2, H // 4
    c_pad = packed['m_all'].shape[1] // (3 * W)
    lane_pad = packed['m_head'].shape[1]

    # (N, C, H, W) -> (steps, B*H, W*c_pad) slabs, lane layout (w, c),
    # B images packed along sublanes per grid step.
    x = jnp.transpose(x_nchw, (0, 2, 3, 1))
    x = jnp.pad(x, ((0, 0), (0, 0), (0, 0), (0, c_pad - c_in)))
    x = x.reshape(steps, B * H, W * c_pad)

    kernel = functools.partial(wrn_fused_kernel, H1=H, H2=H2, H3=H3)

    def full(a):
        return pl.BlockSpec(a.shape, lambda n, nd=a.ndim: (0,) * nd)

    out = pl.pallas_call(
        kernel,
        grid=(steps,),
        in_specs=[
            pl.BlockSpec((None, B * H, W * c_pad), lambda n: (n, 0, 0)),
            full(packed['m_all']), full(packed['bn_all']),
            full(packed['r2']), full(packed['r3']), full(packed['pool']),
            full(packed['m_head']), full(packed['fc_b']),
        ],
        out_specs=pl.BlockSpec((None, B, lane_pad), lambda n: (n, 0, 0)),
        out_shape=jax.ShapeDtypeStruct((steps, B, lane_pad), jnp.float32),
        compiler_params=pltpu.CompilerParams(
            dimension_semantics=("parallel",)),
    )(x, packed['m_all'], packed['bn_all'], packed['r2'], packed['r3'],
      packed['pool'], packed['m_head'], packed['fc_b'])

    return out.reshape(N, lane_pad)[:, :num_cls]


# ----------------------------------------------------------------------------
# Pure-JAX reference (mirrors PyTorch NCHW semantics) for validation
# ----------------------------------------------------------------------------
def ref_forward(x_nchw, P):
    def conv(x, w, s, p):
        return jax.lax.conv_general_dilated(
            x, w, (s, s), [(p, p), (p, p)],
            dimension_numbers=('NCHW', 'OIHW', 'NCHW'), precision=HIGHEST)

    def bnrelu(x, sc_sh):
        scale, shift = sc_sh
        return jnp.maximum(x * scale[None, :, None, None]
                           + shift[None, :, None, None], 0.0)

    h0 = conv(x_nchw, P['conv1'], 1, 1)
    b = P['b1']
    a = bnrelu(h0, b['bn1'])
    o = bnrelu(conv(a, b['conv1'], 1, 1), b['bn2'])
    x1 = h0 + conv(o, b['conv2'], 1, 1)
    b = P['b2']
    a = bnrelu(x1, b['bn1'])
    o = bnrelu(conv(a, b['conv1'], 2, 1), b['bn2'])
    x2 = conv(a, b['short'], 2, 0) + conv(o, b['conv2'], 1, 1)
    b = P['b3']
    a = bnrelu(x2, b['bn1'])
    o = bnrelu(conv(a, b['conv1'], 2, 1), b['bn2'])
    x3 = conv(a, b['short'], 2, 0) + conv(o, b['conv2'], 1, 1)
    h = bnrelu(x3, P['bn_final'])
    pooled = jnp.mean(h, axis=(2, 3))
    return jnp.dot(pooled, P['fc_w'].T, precision=HIGHEST) + P['fc_b']


# ----------------------------------------------------------------------------
# Deterministic parameter construction
# ----------------------------------------------------------------------------
def make_conv_w(key, cout, cin, kh, kw):
    fan_out = cout * kh * kw                      # kaiming_normal_(mode='fan_out')
    std = (2.0 / fan_out) ** 0.5
    return std * jax.random.normal(key, (cout, cin, kh, kw), jnp.float32)


def make_bn(key, c, eps=1e-5):
    k1, k2, k3, k4 = jax.random.split(key, 4)
    gamma = jax.random.uniform(k1, (c,), jnp.float32, 0.8, 1.2)
    beta = 0.1 * jax.random.normal(k2, (c,), jnp.float32)
    running_mean = 0.1 * jax.random.normal(k3, (c,), jnp.float32)
    running_var = jax.random.uniform(k4, (c,), jnp.float32, 0.5, 1.5)
    scale = gamma / jnp.sqrt(running_var + eps)
    shift = beta - running_mean * scale
    return (scale, shift)


def make_params(key, num_cls=10):
    ks = jax.random.split(key, 20)
    nC = [4, 4, 8, 16]                            # base_chans=4, widen_factor=1
    return {
        'conv1': make_conv_w(ks[0], nC[0], 3, 3, 3),
        'b1': {
            'bn1': make_bn(ks[1], nC[0]),
            'conv1': make_conv_w(ks[2], nC[1], nC[0], 3, 3),
            'bn2': make_bn(ks[3], nC[1]),
            'conv2': make_conv_w(ks[4], nC[1], nC[1], 3, 3),
        },
        'b2': {
            'bn1': make_bn(ks[5], nC[1]),
            'conv1': make_conv_w(ks[6], nC[2], nC[1], 3, 3),
            'bn2': make_bn(ks[7], nC[2]),
            'conv2': make_conv_w(ks[8], nC[2], nC[2], 3, 3),
            'short': make_conv_w(ks[9], nC[2], nC[1], 1, 1),
        },
        'b3': {
            'bn1': make_bn(ks[10], nC[2]),
            'conv1': make_conv_w(ks[11], nC[3], nC[2], 3, 3),
            'bn2': make_bn(ks[12], nC[3]),
            'conv2': make_conv_w(ks[13], nC[3], nC[3], 3, 3),
            'short': make_conv_w(ks[14], nC[3], nC[2], 1, 1),
        },
        'bn_final': make_bn(ks[15], nC[3]),
        'fc_w': jax.random.uniform(ks[16], (num_cls, nC[3]), jnp.float32,
                                   -1.0 / (nC[3] ** 0.5), 1.0 / (nC[3] ** 0.5)),
        'fc_b': jnp.zeros((num_cls,), jnp.float32),   # Linear bias zeroed in init
    }


if __name__ == "__main__":
    key = jax.random.PRNGKey(0)
    k_param, k_x = jax.random.split(key)
    num_cls = 10
    params = make_params(k_param, num_cls=num_cls)
    x = jax.random.normal(k_x, (2, 3, 16, 16), jnp.float32)   # NCHW like PyTorch

    # Pack 2 images per grid step along sublanes (keeps B*H3 a multiple of 8).
    B = 2
    packed = prepare_weights(params, images_per_step=B)       # host-side, once

    out = pallas_forward(x, packed, images_per_step=B, num_cls=num_cls)
    out = jax.block_until_ready(out)
    assert out.shape == (2, num_cls)

    ref = ref_forward(x, params)
    # Kernel matmuls run at (default) bf16 MXU precision with f32 accumulation;
    # compare against the f32 HIGHEST reference with matching tolerance.
    np.testing.assert_allclose(np.asarray(out), np.asarray(ref),
                               rtol=5e-2, atol=6e-2)
    print("KERNEL_OK")
</pallas_src>

<mosaic_0001>
module attributes {stable_mosaic.version = 11 : i64} {
  func.func @wrn_fused_kernel(%arg0: i32, %arg1: memref<1x32x64xf32, #tpu.memory_space<vmem>>, %arg2: memref<9x192x64xbf16, #tpu.memory_space<vmem>>, %arg3: memref<14x64xf32, #tpu.memory_space<vmem>>, %arg4: memref<16x32xf32, #tpu.memory_space<vmem>>, %arg5: memref<8x16xf32, #tpu.memory_space<vmem>>, %arg6: memref<2x8xf32, #tpu.memory_space<vmem>>, %arg7: memref<64x128xbf16, #tpu.memory_space<vmem>>, %arg8: memref<1x128xf32, #tpu.memory_space<vmem>>, %arg9: memref<1x2x128xf32, #tpu.memory_space<vmem>>) attributes {dimension_semantics = [#tpu.dimension_semantics<parallel>], iteration_bounds = array<i64: 1>, scalar_prefetch = 0 : i64, scratch_operands = 0 : i64, tpu.core_type = #tpu.core_type<tc>, window_params = [{transform_indices = @transform_0, window_bounds = array<i64: 1, 32, 64>}, {pipeline_mode = #tpu.pipeline_mode<synchronous>, transform_indices = @transform_1, window_bounds = array<i64: 9, 192, 64>}, {pipeline_mode = #tpu.pipeline_mode<synchronous>, transform_indices = @transform_2, window_bounds = array<i64: 14, 64>}, {pipeline_mode = #tpu.pipeline_mode<synchronous>, transform_indices = @transform_3, window_bounds = array<i64: 16, 32>}, {pipeline_mode = #tpu.pipeline_mode<synchronous>, transform_indices = @transform_4, window_bounds = array<i64: 8, 16>}, {pipeline_mode = #tpu.pipeline_mode<synchronous>, transform_indices = @transform_5, window_bounds = array<i64: 2, 8>}, {pipeline_mode = #tpu.pipeline_mode<synchronous>, transform_indices = @transform_6, window_bounds = array<i64: 64, 128>}, {pipeline_mode = #tpu.pipeline_mode<synchronous>, transform_indices = @transform_7, window_bounds = array<i64: 1, 128>}, {transform_indices = @transform_8, window_bounds = array<i64: 1, 2, 128>}]} {
    %c0 = arith.constant 0 : index
    %c0_0 = arith.constant 0 : index
    %c0_1 = arith.constant 0 : index
    %0 = vector.load %arg1[%c0, %c0_0, %c0_1] : memref<1x32x64xf32, #tpu.memory_space<vmem>>, vector<1x32x64xf32>
    %1 = vector.shape_cast %0 : vector<1x32x64xf32> to vector<32x64xf32>
    %2 = tpu.iota {dimensions = array<i32: 0>} : vector<32x1xi32>
    %c16_i32 = arith.constant 16 : i32
    %c0_i32 = arith.constant 0 : i32
    %3 = arith.cmpi eq, %c16_i32, %c0_i32 : i32
    %c1_i32 = arith.constant 1 : i32
    %4 = arith.select %3, %c1_i32, %c16_i32 : i32
    %5 = vector.broadcast %4 : i32 to vector<32x1xi32>
    %6 = arith.remsi %2, %5 : vector<32x1xi32>
    %c0_i32_2 = arith.constant 0 : i32
    %7 = vector.broadcast %c0_i32_2 : i32 to vector<32x1xi32>
    %8 = arith.cmpi ne, %6, %7 : vector<32x1xi32>
    %c0_i32_3 = arith.constant 0 : i32
    %9 = vector.broadcast %c0_i32_3 : i32 to vector<32x1xi32>
    %10 = arith.cmpi slt, %6, %9 : vector<32x1xi32>
    %c0_i32_4 = arith.constant 0 : i32
    %11 = arith.cmpi slt, %4, %c0_i32_4 : i32
    %12 = vector.broadcast %11 : i1 to vector<32x1xi1>
    %13 = vector.broadcast %12 : vector<32x1xi1> to vector<32x1xi1>
    %14 = arith.xori %10, %13 : vector<32x1xi1>
    %15 = arith.andi %14, %8 : vector<32x1xi1>
    %16 = vector.broadcast %4 : i32 to vector<32x1xi32>
    %17 = arith.addi %6, %16 : vector<32x1xi32>
    %18 = arith.select %15, %17, %6 : vector<32x1xi1>, vector<32x1xi32>
    %c0_i32_5 = arith.constant 0 : i32
    %19 = vector.broadcast %c0_i32_5 : i32 to vector<32x1xi32>
    %20 = arith.cmpi ne, %18, %19 : vector<32x1xi32>
    %c1_i32_6 = arith.constant 1 : i32
    %21 = tpu.dynamic_rotate %1 by %c1_i32_6 dim 0 : vector<32x64xf32>, i32 -> vector<32x64xf32>
    %cst = arith.constant 0.000000e+00 : f32
    %22 = vector.shape_cast %20 : vector<32x1xi1> to vector<32x1xi1>
    %23 = vector.broadcast %22 : vector<32x1xi1> to vector<32x64xi1>
    %24 = vector.broadcast %cst : f32 to vector<32x64xf32>
    %25 = arith.select %23, %21, %24 : vector<32x64xi1>, vector<32x64xf32>
    %c16_i32_7 = arith.constant 16 : i32
    %c0_i32_8 = arith.constant 0 : i32
    %26 = arith.cmpi eq, %c16_i32_7, %c0_i32_8 : i32
    %c1_i32_9 = arith.constant 1 : i32
    %27 = arith.select %26, %c1_i32_9, %c16_i32_7 : i32
    %28 = vector.broadcast %27 : i32 to vector<32x1xi32>
    %29 = arith.remsi %2, %28 : vector<32x1xi32>
    %c0_i32_10 = arith.constant 0 : i32
    %30 = vector.broadcast %c0_i32_10 : i32 to vector<32x1xi32>
    %31 = arith.cmpi ne, %29, %30 : vector<32x1xi32>
    %c0_i32_11 = arith.constant 0 : i32
    %32 = vector.broadcast %c0_i32_11 : i32 to vector<32x1xi32>
    %33 = arith.cmpi slt, %29, %32 : vector<32x1xi32>
    %c0_i32_12 = arith.constant 0 : i32
    %34 = arith.cmpi slt, %27, %c0_i32_12 : i32
    %35 = vector.broadcast %34 : i1 to vector<32x1xi1>
    %36 = vector.broadcast %35 : vector<32x1xi1> to vector<32x1xi1>
    %37 = arith.xori %33, %36 : vector<32x1xi1>
    %38 = arith.andi %37, %31 : vector<32x1xi1>
    %39 = vector.broadcast %27 : i32 to vector<32x1xi32>
    %40 = arith.addi %29, %39 : vector<32x1xi32>
    %41 = arith.select %38, %40, %29 : vector<32x1xi1>, vector<32x1xi32>
    %c15_i32 = arith.constant 15 : i32
    %42 = vector.broadcast %c15_i32 : i32 to vector<32x1xi32>
    %43 = arith.cmpi ne, %41, %42 : vector<32x1xi32>
    %c31_i32 = arith.constant 31 : i32
    %44 = tpu.dynamic_rotate %1 by %c31_i32 dim 0 : vector<32x64xf32>, i32 -> vector<32x64xf32>
    %cst_13 = arith.constant 0.000000e+00 : f32
    %45 = vector.shape_cast %43 : vector<32x1xi1> to vector<32x1xi1>
    %46 = vector.broadcast %45 : vector<32x1xi1> to vector<32x64xi1>
    %47 = vector.broadcast %cst_13 : f32 to vector<32x64xf32>
    %48 = arith.select %46, %44, %47 : vector<32x64xi1>, vector<32x64xf32>
    %49 = tpu.concatenate %25, %1, %48 in 1 : vector<32x64xf32>, vector<32x64xf32>, vector<32x64xf32> -> vector<32x192xf32>
    %50 = arith.truncf %49 : vector<32x192xf32> to vector<32x192xbf16>
    %c0_14 = arith.constant 0 : index
    %c0_15 = arith.constant 0 : index
    %c0_16 = arith.constant 0 : index
    %51 = vector.load %arg2[%c0_14, %c0_15, %c0_16] : memref<9x192x64xbf16, #tpu.memory_space<vmem>>, vector<1x192x64xbf16>
    %52 = vector.shape_cast %51 : vector<1x192x64xbf16> to vector<192x64xbf16>
    %cst_17 = arith.constant dense<0.000000e+00> : vector<32x64xf32>
    %53 = tpu.matmul %50, %52, %cst_17 {dimension_numbers = #tpu.dot_dimension_numbers<[1], [0], [0], [1], [0, 0, 1, 1], [], []>} : vector<32x192xbf16>, vector<192x64xbf16>, vector<32x64xf32> -> vector<32x64xf32>
    %c0_18 = arith.constant 0 : index
    %c0_19 = arith.constant 0 : index
    %54 = vector.load %arg3[%c0_18, %c0_19] : memref<14x64xf32, #tpu.memory_space<vmem>>, vector<1x64xf32>
    %c1 = arith.constant 1 : index
    %c0_20 = arith.constant 0 : index
    %55 = vector.load %arg3[%c1, %c0_20] : memref<14x64xf32, #tpu.memory_space<vmem>>, vector<1x64xf32>
    %56 = vector.broadcast %54 : vector<1x64xf32> to vector<32x64xf32>
    %57 = arith.mulf %53, %56 : vector<32x64xf32>
    %58 = vector.broadcast %55 : vector<1x64xf32> to vector<32x64xf32>
    %59 = arith.addf %57, %58 : vector<32x64xf32>
    %cst_21 = arith.constant 0.000000e+00 : f32
    %60 = vector.broadcast %cst_21 : f32 to vector<32x64xf32>
    %61 = arith.maximumf %59, %60 : vector<32x64xf32>
    %62 = tpu.iota {dimensions = array<i32: 0>} : vector<32x1xi32>
    %c16_i32_22 = arith.constant 16 : i32
    %c0_i32_23 = arith.constant 0 : i32
    %63 = arith.cmpi eq, %c16_i32_22, %c0_i32_23 : i32
    %c1_i32_24 = arith.constant 1 : i32
    %64 = arith.select %63, %c1_i32_24, %c16_i32_22 : i32
    %65 = vector.broadcast %64 : i32 to vector<32x1xi32>
    %66 = arith.remsi %62, %65 : vector<32x1xi32>
    %c0_i32_25 = arith.constant 0 : i32
    %67 = vector.broadcast %c0_i32_25 : i32 to vector<32x1xi32>
    %68 = arith.cmpi ne, %66, %67 : vector<32x1xi32>
    %c0_i32_26 = arith.constant 0 : i32
    %69 = vector.broadcast %c0_i32_26 : i32 to vector<32x1xi32>
    %70 = arith.cmpi slt, %66, %69 : vector<32x1xi32>
    %c0_i32_27 = arith.constant 0 : i32
    %71 = arith.cmpi slt, %64, %c0_i32_27 : i32
    %72 = vector.broadcast %71 : i1 to vector<32x1xi1>
    %73 = vector.broadcast %72 : vector<32x1xi1> to vector<32x1xi1>
    %74 = arith.xori %70, %73 : vector<32x1xi1>
    %75 = arith.andi %74, %68 : vector<32x1xi1>
    %76 = vector.broadcast %64 : i32 to vector<32x1xi32>
    %77 = arith.addi %66, %76 : vector<32x1xi32>
    %78 = arith.select %75, %77, %66 : vector<32x1xi1>, vector<32x1xi32>
    %c0_i32_28 = arith.constant 0 : i32
    %79 = vector.broadcast %c0_i32_28 : i32 to vector<32x1xi32>
    %80 = arith.cmpi ne, %78, %79 : vector<32x1xi32>
    %c1_i32_29 = arith.constant 1 : i32
    %81 = tpu.dynamic_rotate %61 by %c1_i32_29 dim 0 : vector<32x64xf32>, i32 -> vector<32x64xf32>
    %cst_30 = arith.constant 0.000000e+00 : f32
    %82 = vector.shape_cast %80 : vector<32x1xi1> to vector<32x1xi1>
    %83 = vector.broadcast %82 : vector<32x1xi1> to vector<32x64xi1>
    %84 = vector.broadcast %cst_30 : f32 to vector<32x64xf32>
    %85 = arith.select %83, %81, %84 : vector<32x64xi1>, vector<32x64xf32>
    %c16_i32_31 = arith.constant 16 : i32
    %c0_i32_32 = arith.constant 0 : i32
    %86 = arith.cmpi eq, %c16_i32_31, %c0_i32_32 : i32
    %c1_i32_33 = arith.constant 1 : i32
    %87 = arith.select %86, %c1_i32_33, %c16_i32_31 : i32
    %88 = vector.broadcast %87 : i32 to vector<32x1xi32>
    %89 = arith.remsi %62, %88 : vector<32x1xi32>
    %c0_i32_34 = arith.constant 0 : i32
    %90 = vector.broadcast %c0_i32_34 : i32 to vector<32x1xi32>
    %91 = arith.cmpi ne, %89, %90 : vector<32x1xi32>
    %c0_i32_35 = arith.constant 0 : i32
    %92 = vector.broadcast %c0_i32_35 : i32 to vector<32x1xi32>
    %93 = arith.cmpi slt, %89, %92 : vector<32x1xi32>
    %c0_i32_36 = arith.constant 0 : i32
    %94 = arith.cmpi slt, %87, %c0_i32_36 : i32
    %95 = vector.broadcast %94 : i1 to vector<32x1xi1>
    %96 = vector.broadcast %95 : vector<32x1xi1> to vector<32x1xi1>
    %97 = arith.xori %93, %96 : vector<32x1xi1>
    %98 = arith.andi %97, %91 : vector<32x1xi1>
    %99 = vector.broadcast %87 : i32 to vector<32x1xi32>
    %100 = arith.addi %89, %99 : vector<32x1xi32>
    %101 = arith.select %98, %100, %89 : vector<32x1xi1>, vector<32x1xi32>
    %c15_i32_37 = arith.constant 15 : i32
    %102 = vector.broadcast %c15_i32_37 : i32 to vector<32x1xi32>
    %103 = arith.cmpi ne, %101, %102 : vector<32x1xi32>
    %c31_i32_38 = arith.constant 31 : i32
    %104 = tpu.dynamic_rotate %61 by %c31_i32_38 dim 0 : vector<32x64xf32>, i32 -> vector<32x64xf32>
    %cst_39 = arith.constant 0.000000e+00 : f32
    %105 = vector.shape_cast %103 : vector<32x1xi1> to vector<32x1xi1>
    %106 = vector.broadcast %105 : vector<32x1xi1> to vector<32x64xi1>
    %107 = vector.broadcast %cst_39 : f32 to vector<32x64xf32>
    %108 = arith.select %106, %104, %107 : vector<32x64xi1>, vector<32x64xf32>
    %109 = tpu.concatenate %85, %61, %108 in 1 : vector<32x64xf32>, vector<32x64xf32>, vector<32x64xf32> -> vector<32x192xf32>
    %110 = arith.truncf %109 : vector<32x192xf32> to vector<32x192xbf16>
    %c1_40 = arith.constant 1 : index
    %c0_41 = arith.constant 0 : index
    %c0_42 = arith.constant 0 : index
    %111 = vector.load %arg2[%c1_40, %c0_41, %c0_42] : memref<9x192x64xbf16, #tpu.memory_space<vmem>>, vector<1x192x64xbf16>
    %112 = vector.shape_cast %111 : vector<1x192x64xbf16> to vector<192x64xbf16>
    %cst_43 = arith.constant dense<0.000000e+00> : vector<32x64xf32>
    %113 = tpu.matmul %110, %112, %cst_43 {dimension_numbers = #tpu.dot_dimension_numbers<[1], [0], [0], [1], [0, 0, 1, 1], [], []>} : vector<32x192xbf16>, vector<192x64xbf16>, vector<32x64xf32> -> vector<32x64xf32>
    %c2 = arith.constant 2 : index
    %c0_44 = arith.constant 0 : index
    %114 = vector.load %arg3[%c2, %c0_44] : memref<14x64xf32, #tpu.memory_space<vmem>>, vector<1x64xf32>
    %c3 = arith.constant 3 : index
    %c0_45 = arith.constant 0 : index
    %115 = vector.load %arg3[%c3, %c0_45] : memref<14x64xf32, #tpu.memory_space<vmem>>, vector<1x64xf32>
    %116 = vector.broadcast %114 : vector<1x64xf32> to vector<32x64xf32>
    %117 = arith.mulf %113, %116 : vector<32x64xf32>
    %118 = vector.broadcast %115 : vector<1x64xf32> to vector<32x64xf32>
    %119 = arith.addf %117, %118 : vector<32x64xf32>
    %cst_46 = arith.constant 0.000000e+00 : f32
    %120 = vector.broadcast %cst_46 : f32 to vector<32x64xf32>
    %121 = arith.maximumf %119, %120 : vector<32x64xf32>
    %122 = tpu.iota {dimensions = array<i32: 0>} : vector<32x1xi32>
    %c16_i32_47 = arith.constant 16 : i32
    %c0_i32_48 = arith.constant 0 : i32
    %123 = arith.cmpi eq, %c16_i32_47, %c0_i32_48 : i32
    %c1_i32_49 = arith.constant 1 : i32
    %124 = arith.select %123, %c1_i32_49, %c16_i32_47 : i32
    %125 = vector.broadcast %124 : i32 to vector<32x1xi32>
    %126 = arith.remsi %122, %125 : vector<32x1xi32>
    %c0_i32_50 = arith.constant 0 : i32
    %127 = vector.broadcast %c0_i32_50 : i32 to vector<32x1xi32>
    %128 = arith.cmpi ne, %126, %127 : vector<32x1xi32>
    %c0_i32_51 = arith.constant 0 : i32
    %129 = vector.broadcast %c0_i32_51 : i32 to vector<32x1xi32>
    %130 = arith.cmpi slt, %126, %129 : vector<32x1xi32>
    %c0_i32_52 = arith.constant 0 : i32
    %131 = arith.cmpi slt, %124, %c0_i32_52 : i32
    %132 = vector.broadcast %131 : i1 to vector<32x1xi1>
    %133 = vector.broadcast %132 : vector<32x1xi1> to vector<32x1xi1>
    %134 = arith.xori %130, %133 : vector<32x1xi1>
    %135 = arith.andi %134, %128 : vector<32x1xi1>
    %136 = vector.broadcast %124 : i32 to vector<32x1xi32>
    %137 = arith.addi %126, %136 : vector<32x1xi32>
    %138 = arith.select %135, %137, %126 : vector<32x1xi1>, vector<32x1xi32>
    %c0_i32_53 = arith.constant 0 : i32
    %139 = vector.broadcast %c0_i32_53 : i32 to vector<32x1xi32>
    %140 = arith.cmpi ne, %138, %139 : vector<32x1xi32>
    %c1_i32_54 = arith.constant 1 : i32
    %141 = tpu.dynamic_rotate %121 by %c1_i32_54 dim 0 : vector<32x64xf32>, i32 -> vector<32x64xf32>
    %cst_55 = arith.constant 0.000000e+00 : f32
    %142 = vector.shape_cast %140 : vector<32x1xi1> to vector<32x1xi1>
    %143 = vector.broadcast %142 : vector<32x1xi1> to vector<32x64xi1>
    %144 = vector.broadcast %cst_55 : f32 to vector<32x64xf32>
    %145 = arith.select %143, %141, %144 : vector<32x64xi1>, vector<32x64xf32>
    %c16_i32_56 = arith.constant 16 : i32
    %c0_i32_57 = arith.constant 0 : i32
    %146 = arith.cmpi eq, %c16_i32_56, %c0_i32_57 : i32
    %c1_i32_58 = arith.constant 1 : i32
    %147 = arith.select %146, %c1_i32_58, %c16_i32_56 : i32
    %148 = vector.broadcast %147 : i32 to vector<32x1xi32>
    %149 = arith.remsi %122, %148 : vector<32x1xi32>
    %c0_i32_59 = arith.constant 0 : i32
    %150 = vector.broadcast %c0_i32_59 : i32 to vector<32x1xi32>
    %151 = arith.cmpi ne, %149, %150 : vector<32x1xi32>
    %c0_i32_60 = arith.constant 0 : i32
    %152 = vector.broadcast %c0_i32_60 : i32 to vector<32x1xi32>
    %153 = arith.cmpi slt, %149, %152 : vector<32x1xi32>
    %c0_i32_61 = arith.constant 0 : i32
    %154 = arith.cmpi slt, %147, %c0_i32_61 : i32
    %155 = vector.broadcast %154 : i1 to vector<32x1xi1>
    %156 = vector.broadcast %155 : vector<32x1xi1> to vector<32x1xi1>
    %157 = arith.xori %153, %156 : vector<32x1xi1>
    %158 = arith.andi %157, %151 : vector<32x1xi1>
    %159 = vector.broadcast %147 : i32 to vector<32x1xi32>
    %160 = arith.addi %149, %159 : vector<32x1xi32>
    %161 = arith.select %158, %160, %149 : vector<32x1xi1>, vector<32x1xi32>
    %c15_i32_62 = arith.constant 15 : i32
    %162 = vector.broadcast %c15_i32_62 : i32 to vector<32x1xi32>
    %163 = arith.cmpi ne, %161, %162 : vector<32x1xi32>
    %c31_i32_63 = arith.constant 31 : i32
    %164 = tpu.dynamic_rotate %121 by %c31_i32_63 dim 0 : vector<32x64xf32>, i32 -> vector<32x64xf32>
    %cst_64 = arith.constant 0.000000e+00 : f32
    %165 = vector.shape_cast %163 : vector<32x1xi1> to vector<32x1xi1>
    %166 = vector.broadcast %165 : vector<32x1xi1> to vector<32x64xi1>
    %167 = vector.broadcast %cst_64 : f32 to vector<32x64xf32>
    %168 = arith.select %166, %164, %167 : vector<32x64xi1>, vector<32x64xf32>
    %169 = tpu.concatenate %145, %121, %168 in 1 : vector<32x64xf32>, vector<32x64xf32>, vector<32x64xf32> -> vector<32x192xf32>
    %170 = arith.truncf %169 : vector<32x192xf32> to vector<32x192xbf16>
    %c2_65 = arith.constant 2 : index
    %c0_66 = arith.constant 0 : index
    %c0_67 = arith.constant 0 : index
    %171 = vector.load %arg2[%c2_65, %c0_66, %c0_67] : memref<9x192x64xbf16, #tpu.memory_space<vmem>>, vector<1x192x64xbf16>
    %172 = vector.shape_cast %171 : vector<1x192x64xbf16> to vector<192x64xbf16>
    %cst_68 = arith.constant dense<0.000000e+00> : vector<32x64xf32>
    %173 = tpu.matmul %170, %172, %cst_68 {dimension_numbers = #tpu.dot_dimension_numbers<[1], [0], [0], [1], [0, 0, 1, 1], [], []>} : vector<32x192xbf16>, vector<192x64xbf16>, vector<32x64xf32> -> vector<32x64xf32>
    %174 = arith.addf %53, %173 : vector<32x64xf32>
    %c4 = arith.constant 4 : index
    %c0_69 = arith.constant 0 : index
    %175 = vector.load %arg3[%c4, %c0_69] : memref<14x64xf32, #tpu.memory_space<vmem>>, vector<1x64xf32>
    %c5 = arith.constant 5 : index
    %c0_70 = arith.constant 0 : index
    %176 = vector.load %arg3[%c5, %c0_70] : memref<14x64xf32, #tpu.memory_space<vmem>>, vector<1x64xf32>
    %177 = vector.broadcast %175 : vector<1x64xf32> to vector<32x64xf32>
    %178 = arith.mulf %174, %177 : vector<32x64xf32>
    %179 = vector.broadcast %176 : vector<1x64xf32> to vector<32x64xf32>
    %180 = arith.addf %178, %179 : vector<32x64xf32>
    %cst_71 = arith.constant 0.000000e+00 : f32
    %181 = vector.broadcast %cst_71 : f32 to vector<32x64xf32>
    %182 = arith.maximumf %180, %181 : vector<32x64xf32>
    %c0_72 = arith.constant 0 : index
    %c0_73 = arith.constant 0 : index
    %183 = vector.load %arg4[%c0_72, %c0_73] : memref<16x32xf32, #tpu.memory_space<vmem>>, vector<16x32xf32>
    %184 = tpu.iota {dimensions = array<i32: 0>} : vector<32x1xi32>
    %c16_i32_74 = arith.constant 16 : i32
    %c0_i32_75 = arith.constant 0 : i32
    %185 = arith.cmpi eq, %c16_i32_74, %c0_i32_75 : i32
    %c1_i32_76 = arith.constant 1 : i32
    %186 = arith.select %185, %c1_i32_76, %c16_i32_74 : i32
    %187 = vector.broadcast %186 : i32 to vector<32x1xi32>
    %188 = arith.remsi %184, %187 : vector<32x1xi32>
    %c0_i32_77 = arith.constant 0 : i32
    %189 = vector.broadcast %c0_i32_77 : i32 to vector<32x1xi32>
    %190 = arith.cmpi ne, %188, %189 : vector<32x1xi32>
    %c0_i32_78 = arith.constant 0 : i32
    %191 = vector.broadcast %c0_i32_78 : i32 to vector<32x1xi32>
    %192 = arith.cmpi slt, %188, %191 : vector<32x1xi32>
    %c0_i32_79 = arith.constant 0 : i32
    %193 = arith.cmpi slt, %186, %c0_i32_79 : i32
    %194 = vector.broadcast %193 : i1 to vector<32x1xi1>
    %195 = vector.broadcast %194 : vector<32x1xi1> to vector<32x1xi1>
    %196 = arith.xori %192, %195 : vector<32x1xi1>
    %197 = arith.andi %196, %190 : vector<32x1xi1>
    %198 = vector.broadcast %186 : i32 to vector<32x1xi32>
    %199 = arith.addi %188, %198 : vector<32x1xi32>
    %200 = arith.select %197, %199, %188 : vector<32x1xi1>, vector<32x1xi32>
    %c0_i32_80 = arith.constant 0 : i32
    %201 = vector.broadcast %c0_i32_80 : i32 to vector<32x1xi32>
    %202 = arith.cmpi ne, %200, %201 : vector<32x1xi32>
    %c1_i32_81 = arith.constant 1 : i32
    %203 = tpu.dynamic_rotate %182 by %c1_i32_81 dim 0 : vector<32x64xf32>, i32 -> vector<32x64xf32>
    %cst_82 = arith.constant 0.000000e+00 : f32
    %204 = vector.shape_cast %202 : vector<32x1xi1> to vector<32x1xi1>
    %205 = vector.broadcast %204 : vector<32x1xi1> to vector<32x64xi1>
    %206 = vector.broadcast %cst_82 : f32 to vector<32x64xf32>
    %207 = arith.select %205, %203, %206 : vector<32x64xi1>, vector<32x64xf32>
    %c16_i32_83 = arith.constant 16 : i32
    %c0_i32_84 = arith.constant 0 : i32
    %208 = arith.cmpi eq, %c16_i32_83, %c0_i32_84 : i32
    %c1_i32_85 = arith.constant 1 : i32
    %209 = arith.select %208, %c1_i32_85, %c16_i32_83 : i32
    %210 = vector.broadcast %209 : i32 to vector<32x1xi32>
    %211 = arith.remsi %184, %210 : vector<32x1xi32>
    %c0_i32_86 = arith.constant 0 : i32
    %212 = vector.broadcast %c0_i32_86 : i32 to vector<32x1xi32>
    %213 = arith.cmpi ne, %211, %212 : vector<32x1xi32>
    %c0_i32_87 = arith.constant 0 : i32
    %214 = vector.broadcast %c0_i32_87 : i32 to vector<32x1xi32>
    %215 = arith.cmpi slt, %211, %214 : vector<32x1xi32>
    %c0_i32_88 = arith.constant 0 : i32
    %216 = arith.cmpi slt, %209, %c0_i32_88 : i32
    %217 = vector.broadcast %216 : i1 to vector<32x1xi1>
    %218 = vector.broadcast %217 : vector<32x1xi1> to vector<32x1xi1>
    %219 = arith.xori %215, %218 : vector<32x1xi1>
    %220 = arith.andi %219, %213 : vector<32x1xi1>
    %221 = vector.broadcast %209 : i32 to vector<32x1xi32>
    %222 = arith.addi %211, %221 : vector<32x1xi32>
    %223 = arith.select %220, %222, %211 : vector<32x1xi1>, vector<32x1xi32>
    %c15_i32_89 = arith.constant 15 : i32
    %224 = vector.broadcast %c15_i32_89 : i32 to vector<32x1xi32>
    %225 = arith.cmpi ne, %223, %224 : vector<32x1xi32>
    %c31_i32_90 = arith.constant 31 : i32
    %226 = tpu.dynamic_rotate %182 by %c31_i32_90 dim 0 : vector<32x64xf32>, i32 -> vector<32x64xf32>
    %cst_91 = arith.constant 0.000000e+00 : f32
    %227 = vector.shape_cast %225 : vector<32x1xi1> to vector<32x1xi1>
    %228 = vector.broadcast %227 : vector<32x1xi1> to vector<32x64xi1>
    %229 = vector.broadcast %cst_91 : f32 to vector<32x64xf32>
    %230 = arith.select %228, %226, %229 : vector<32x64xi1>, vector<32x64xf32>
    %231 = tpu.concatenate %207, %182, %230 in 1 : vector<32x64xf32>, vector<32x64xf32>, vector<32x64xf32> -> vector<32x192xf32>
    %cst_92 = arith.constant dense<0.000000e+00> : vector<16x192xf32>
    %232 = tpu.matmul %183, %231, %cst_92 {dimension_numbers = #tpu.dot_dimension_numbers<[1], [0], [0], [1], [0, 0, 1, 1], [], []>} : vector<16x32xf32>, vector<32x192xf32>, vector<16x192xf32> -> vector<16x192xf32>
    %233 = arith.truncf %232 : vector<16x192xf32> to vector<16x192xbf16>
    %c3_93 = arith.constant 3 : index
    %c0_94 = arith.constant 0 : index
    %c0_95 = arith.constant 0 : index
    %234 = vector.load %arg2[%c3_93, %c0_94, %c0_95] : memref<9x192x64xbf16, #tpu.memory_space<vmem>>, vector<1x192x64xbf16>
    %235 = vector.shape_cast %234 : vector<1x192x64xbf16> to vector<192x64xbf16>
    %cst_96 = arith.constant dense<0.000000e+00> : vector<16x64xf32>
    %236 = tpu.matmul %233, %235, %cst_96 {dimension_numbers = #tpu.dot_dimension_numbers<[1], [0], [0], [1], [0, 0, 1, 1], [], []>} : vector<16x192xbf16>, vector<192x64xbf16>, vector<16x64xf32> -> vector<16x64xf32>
    %c6 = arith.constant 6 : index
    %c0_97 = arith.constant 0 : index
    %237 = vector.load %arg3[%c6, %c0_97] : memref<14x64xf32, #tpu.memory_space<vmem>>, vector<1x64xf32>
    %c7 = arith.constant 7 : index
    %c0_98 = arith.constant 0 : index
    %238 = vector.load %arg3[%c7, %c0_98] : memref<14x64xf32, #tpu.memory_space<vmem>>, vector<1x64xf32>
    %239 = vector.broadcast %237 : vector<1x64xf32> to vector<16x64xf32>
    %240 = arith.mulf %236, %239 : vector<16x64xf32>
    %241 = vector.broadcast %238 : vector<1x64xf32> to vector<16x64xf32>
    %242 = arith.addf %240, %241 : vector<16x64xf32>
    %cst_99 = arith.constant 0.000000e+00 : f32
    %243 = vector.broadcast %cst_99 : f32 to vector<16x64xf32>
    %244 = arith.maximumf %242, %243 : vector<16x64xf32>
    %245 = arith.truncf %232 : vector<16x192xf32> to vector<16x192xbf16>
    %c4_100 = arith.constant 4 : index
    %c0_101 = arith.constant 0 : index
    %c0_102 = arith.constant 0 : index
    %246 = vector.load %arg2[%c4_100, %c0_101, %c0_102] : memref<9x192x64xbf16, #tpu.memory_space<vmem>>, vector<1x192x64xbf16>
    %247 = vector.shape_cast %246 : vector<1x192x64xbf16> to vector<192x64xbf16>
    %cst_103 = arith.constant dense<0.000000e+00> : vector<16x64xf32>
    %248 = tpu.matmul %245, %247, %cst_103 {dimension_numbers = #tpu.dot_dimension_numbers<[1], [0], [0], [1], [0, 0, 1, 1], [], []>} : vector<16x192xbf16>, vector<192x64xbf16>, vector<16x64xf32> -> vector<16x64xf32>
    %249 = tpu.iota {dimensions = array<i32: 0>} : vector<16x1xi32>
    %c8_i32 = arith.constant 8 : i32
    %c0_i32_104 = arith.constant 0 : i32
    %250 = arith.cmpi eq, %c8_i32, %c0_i32_104 : i32
    %c1_i32_105 = arith.constant 1 : i32
    %251 = arith.select %250, %c1_i32_105, %c8_i32 : i32
    %252 = vector.broadcast %251 : i32 to vector<16x1xi32>
    %253 = arith.remsi %249, %252 : vector<16x1xi32>
    %c0_i32_106 = arith.constant 0 : i32
    %254 = vector.broadcast %c0_i32_106 : i32 to vector<16x1xi32>
    %255 = arith.cmpi ne, %253, %254 : vector<16x1xi32>
    %c0_i32_107 = arith.constant 0 : i32
    %256 = vector.broadcast %c0_i32_107 : i32 to vector<16x1xi32>
    %257 = arith.cmpi slt, %253, %256 : vector<16x1xi32>
    %c0_i32_108 = arith.constant 0 : i32
    %258 = arith.cmpi slt, %251, %c0_i32_108 : i32
    %259 = vector.broadcast %258 : i1 to vector<16x1xi1>
    %260 = vector.broadcast %259 : vector<16x1xi1> to vector<16x1xi1>
    %261 = arith.xori %257, %260 : vector<16x1xi1>
    %262 = arith.andi %261, %255 : vector<16x1xi1>
    %263 = vector.broadcast %251 : i32 to vector<16x1xi32>
    %264 = arith.addi %253, %263 : vector<16x1xi32>
    %265 = arith.select %262, %264, %253 : vector<16x1xi1>, vector<16x1xi32>
    %c0_i32_109 = arith.constant 0 : i32
    %266 = vector.broadcast %c0_i32_109 : i32 to vector<16x1xi32>
    %267 = arith.cmpi ne, %265, %266 : vector<16x1xi32>
    %c1_i32_110 = arith.constant 1 : i32
    %268 = tpu.dynamic_rotate %244 by %c1_i32_110 dim 0 : vector<16x64xf32>, i32 -> vector<16x64xf32>
    %cst_111 = arith.constant 0.000000e+00 : f32
    %269 = vector.shape_cast %267 : vector<16x1xi1> to vector<16x1xi1>
    %270 = vector.broadcast %269 : vector<16x1xi1> to vector<16x64xi1>
    %271 = vector.broadcast %cst_111 : f32 to vector<16x64xf32>
    %272 = arith.select %270, %268, %271 : vector<16x64xi1>, vector<16x64xf32>
    %c8_i32_112 = arith.constant 8 : i32
    %c0_i32_113 = arith.constant 0 : i32
    %273 = arith.cmpi eq, %c8_i32_112, %c0_i32_113 : i32
    %c1_i32_114 = arith.constant 1 : i32
    %274 = arith.select %273, %c1_i32_114, %c8_i32_112 : i32
    %275 = vector.broadcast %274 : i32 to vector<16x1xi32>
    %276 = arith.remsi %249, %275 : vector<16x1xi32>
    %c0_i32_115 = arith.constant 0 : i32
    %277 = vector.broadcast %c0_i32_115 : i32 to vector<16x1xi32>
    %278 = arith.cmpi ne, %276, %277 : vector<16x1xi32>
    %c0_i32_116 = arith.constant 0 : i32
    %279 = vector.broadcast %c0_i32_116 : i32 to vector<16x1xi32>
    %280 = arith.cmpi slt, %276, %279 : vector<16x1xi32>
    %c0_i32_117 = arith.constant 0 : i32
    %281 = arith.cmpi slt, %274, %c0_i32_117 : i32
    %282 = vector.broadcast %281 : i1 to vector<16x1xi1>
    %283 = vector.broadcast %282 : vector<16x1xi1> to vector<16x1xi1>
    %284 = arith.xori %280, %283 : vector<16x1xi1>
    %285 = arith.andi %284, %278 : vector<16x1xi1>
    %286 = vector.broadcast %274 : i32 to vector<16x1xi32>
    %287 = arith.addi %276, %286 : vector<16x1xi32>
    %288 = arith.select %285, %287, %276 : vector<16x1xi1>, vector<16x1xi32>
    %c7_i32 = arith.constant 7 : i32
    %289 = vector.broadcast %c7_i32 : i32 to vector<16x1xi32>
    %290 = arith.cmpi ne, %288, %289 : vector<16x1xi32>
    %c15_i32_118 = arith.constant 15 : i32
    %291 = tpu.dynamic_rotate %244 by %c15_i32_118 dim 0 : vector<16x64xf32>, i32 -> vector<16x64xf32>
    %cst_119 = arith.constant 0.000000e+00 : f32
    %292 = vector.shape_cast %290 : vector<16x1xi1> to vector<16x1xi1>
    %293 = vector.broadcast %292 : vector<16x1xi1> to vector<16x64xi1>
    %294 = vector.broadcast %cst_119 : f32 to vector<16x64xf32>
    %295 = arith.select %293, %291, %294 : vector<16x64xi1>, vector<16x64xf32>
    %296 = tpu.concatenate %272, %244, %295 in 1 : vector<16x64xf32>, vector<16x64xf32>, vector<16x64xf32> -> vector<16x192xf32>
    %297 = arith.truncf %296 : vector<16x192xf32> to vector<16x192xbf16>
    %c5_120 = arith.constant 5 : index
    %c0_121 = arith.constant 0 : index
    %c0_122 = arith.constant 0 : index
    %298 = vector.load %arg2[%c5_120, %c0_121, %c0_122] : memref<9x192x64xbf16, #tpu.memory_space<vmem>>, vector<1x192x64xbf16>
    %299 = vector.shape_cast %298 : vector<1x192x64xbf16> to vector<192x64xbf16>
    %cst_123 = arith.constant dense<0.000000e+00> : vector<16x64xf32>
    %300 = tpu.matmul %297, %299, %cst_123 {dimension_numbers = #tpu.dot_dimension_numbers<[1], [0], [0], [1], [0, 0, 1, 1], [], []>} : vector<16x192xbf16>, vector<192x64xbf16>, vector<16x64xf32> -> vector<16x64xf32>
    %301 = arith.addf %248, %300 : vector<16x64xf32>
    %c8 = arith.constant 8 : index
    %c0_124 = arith.constant 0 : index
    %302 = vector.load %arg3[%c8, %c0_124] : memref<14x64xf32, #tpu.memory_space<vmem>>, vector<1x64xf32>
    %c9 = arith.constant 9 : index
    %c0_125 = arith.constant 0 : index
    %303 = vector.load %arg3[%c9, %c0_125] : memref<14x64xf32, #tpu.memory_space<vmem>>, vector<1x64xf32>
    %304 = vector.broadcast %302 : vector<1x64xf32> to vector<16x64xf32>
    %305 = arith.mulf %301, %304 : vector<16x64xf32>
    %306 = vector.broadcast %303 : vector<1x64xf32> to vector<16x64xf32>
    %307 = arith.addf %305, %306 : vector<16x64xf32>
    %cst_126 = arith.constant 0.000000e+00 : f32
    %308 = vector.broadcast %cst_126 : f32 to vector<16x64xf32>
    %309 = arith.maximumf %307, %308 : vector<16x64xf32>
    %c0_127 = arith.constant 0 : index
    %c0_128 = arith.constant 0 : index
    %310 = vector.load %arg5[%c0_127, %c0_128] : memref<8x16xf32, #tpu.memory_space<vmem>>, vector<8x16xf32>
    %311 = tpu.iota {dimensions = array<i32: 0>} : vector<16x1xi32>
    %c8_i32_129 = arith.constant 8 : i32
    %c0_i32_130 = arith.constant 0 : i32
    %312 = arith.cmpi eq, %c8_i32_129, %c0_i32_130 : i32
    %c1_i32_131 = arith.constant 1 : i32
    %313 = arith.select %312, %c1_i32_131, %c8_i32_129 : i32
    %314 = vector.broadcast %313 : i32 to vector<16x1xi32>
    %315 = arith.remsi %311, %314 : vector<16x1xi32>
    %c0_i32_132 = arith.constant 0 : i32
    %316 = vector.broadcast %c0_i32_132 : i32 to vector<16x1xi32>
    %317 = arith.cmpi ne, %315, %316 : vector<16x1xi32>
    %c0_i32_133 = arith.constant 0 : i32
    %318 = vector.broadcast %c0_i32_133 : i32 to vector<16x1xi32>
    %319 = arith.cmpi slt, %315, %318 : vector<16x1xi32>
    %c0_i32_134 = arith.constant 0 : i32
    %320 = arith.cmpi slt, %313, %c0_i32_134 : i32
    %321 = vector.broadcast %320 : i1 to vector<16x1xi1>
    %322 = vector.broadcast %321 : vector<16x1xi1> to vector<16x1xi1>
    %323 = arith.xori %319, %322 : vector<16x1xi1>
    %324 = arith.andi %323, %317 : vector<16x1xi1>
    %325 = vector.broadcast %313 : i32 to vector<16x1xi32>
    %326 = arith.addi %315, %325 : vector<16x1xi32>
    %327 = arith.select %324, %326, %315 : vector<16x1xi1>, vector<16x1xi32>
    %c0_i32_135 = arith.constant 0 : i32
    %328 = vector.broadcast %c0_i32_135 : i32 to vector<16x1xi32>
    %329 = arith.cmpi ne, %327, %328 : vector<16x1xi32>
    %c1_i32_136 = arith.constant 1 : i32
    %330 = tpu.dynamic_rotate %309 by %c1_i32_136 dim 0 : vector<16x64xf32>, i32 -> vector<16x64xf32>
    %cst_137 = arith.constant 0.000000e+00 : f32
    %331 = vector.shape_cast %329 : vector<16x1xi1> to vector<16x1xi1>
    %332 = vector.broadcast %331 : vector<16x1xi1> to vector<16x64xi1>
    %333 = vector.broadcast %cst_137 : f32 to vector<16x64xf32>
    %334 = arith.select %332, %330, %333 : vector<16x64xi1>, vector<16x64xf32>
    %c8_i32_138 = arith.constant 8 : i32
    %c0_i32_139 = arith.constant 0 : i32
    %335 = arith.cmpi eq, %c8_i32_138, %c0_i32_139 : i32
    %c1_i32_140 = arith.constant 1 : i32
    %336 = arith.select %335, %c1_i32_140, %c8_i32_138 : i32
    %337 = vector.broadcast %336 : i32 to vector<16x1xi32>
    %338 = arith.remsi %311, %337 : vector<16x1xi32>
    %c0_i32_141 = arith.constant 0 : i32
    %339 = vector.broadcast %c0_i32_141 : i32 to vector<16x1xi32>
    %340 = arith.cmpi ne, %338, %339 : vector<16x1xi32>
    %c0_i32_142 = arith.constant 0 : i32
    %341 = vector.broadcast %c0_i32_142 : i32 to vector<16x1xi32>
    %342 = arith.cmpi slt, %338, %341 : vector<16x1xi32>
    %c0_i32_143 = arith.constant 0 : i32
    %343 = arith.cmpi slt, %336, %c0_i32_143 : i32
    %344 = vector.broadcast %343 : i1 to vector<16x1xi1>
    %345 = vector.broadcast %344 : vector<16x1xi1> to vector<16x1xi1>
    %346 = arith.xori %342, %345 : vector<16x1xi1>
    %347 = arith.andi %346, %340 : vector<16x1xi1>
    %348 = vector.broadcast %336 : i32 to vector<16x1xi32>
    %349 = arith.addi %338, %348 : vector<16x1xi32>
    %350 = arith.select %347, %349, %338 : vector<16x1xi1>, vector<16x1xi32>
    %c7_i32_144 = arith.constant 7 : i32
    %351 = vector.broadcast %c7_i32_144 : i32 to vector<16x1xi32>
    %352 = arith.cmpi ne, %350, %351 : vector<16x1xi32>
    %c15_i32_145 = arith.constant 15 : i32
    %353 = tpu.dynamic_rotate %309 by %c15_i32_145 dim 0 : vector<16x64xf32>, i32 -> vector<16x64xf32>
    %cst_146 = arith.constant 0.000000e+00 : f32
    %354 = vector.shape_cast %352 : vector<16x1xi1> to vector<16x1xi1>
    %355 = vector.broadcast %354 : vector<16x1xi1> to vector<16x64xi1>
    %356 = vector.broadcast %cst_146 : f32 to vector<16x64xf32>
    %357 = arith.select %355, %353, %356 : vector<16x64xi1>, vector<16x64xf32>
    %358 = tpu.concatenate %334, %309, %357 in 1 : vector<16x64xf32>, vector<16x64xf32>, vector<16x64xf32> -> vector<16x192xf32>
    %cst_147 = arith.constant dense<0.000000e+00> : vector<8x192xf32>
    %359 = tpu.matmul %310, %358, %cst_147 {dimension_numbers = #tpu.dot_dimension_numbers<[1], [0], [0], [1], [0, 0, 1, 1], [], []>} : vector<8x16xf32>, vector<16x192xf32>, vector<8x192xf32> -> vector<8x192xf32>
    %360 = arith.truncf %359 : vector<8x192xf32> to vector<8x192xbf16>
    %c6_148 = arith.constant 6 : index
    %c0_149 = arith.constant 0 : index
    %c0_150 = arith.constant 0 : index
    %361 = vector.load %arg2[%c6_148, %c0_149, %c0_150] : memref<9x192x64xbf16, #tpu.memory_space<vmem>>, vector<1x192x64xbf16>
    %362 = vector.shape_cast %361 : vector<1x192x64xbf16> to vector<192x64xbf16>
    %cst_151 = arith.constant dense<0.000000e+00> : vector<8x64xf32>
    %363 = tpu.matmul %360, %362, %cst_151 {dimension_numbers = #tpu.dot_dimension_numbers<[1], [0], [0], [1], [0, 0, 1, 1], [], []>} : vector<8x192xbf16>, vector<192x64xbf16>, vector<8x64xf32> -> vector<8x64xf32>
    %c10 = arith.constant 10 : index
    %c0_152 = arith.constant 0 : index
    %364 = vector.load %arg3[%c10, %c0_152] : memref<14x64xf32, #tpu.memory_space<vmem>>, vector<1x64xf32>
    %c11 = arith.constant 11 : index
    %c0_153 = arith.constant 0 : index
    %365 = vector.load %arg3[%c11, %c0_153] : memref<14x64xf32, #tpu.memory_space<vmem>>, vector<1x64xf32>
    %366 = vector.broadcast %364 : vector<1x64xf32> to vector<8x64xf32>
    %367 = arith.mulf %363, %366 : vector<8x64xf32>
    %368 = vector.broadcast %365 : vector<1x64xf32> to vector<8x64xf32>
    %369 = arith.addf %367, %368 : vector<8x64xf32>
    %cst_154 = arith.constant 0.000000e+00 : f32
    %370 = vector.broadcast %cst_154 : f32 to vector<8x64xf32>
    %371 = arith.maximumf %369, %370 : vector<8x64xf32>
    %372 = arith.truncf %359 : vector<8x192xf32> to vector<8x192xbf16>
    %c7_155 = arith.constant 7 : index
    %c0_156 = arith.constant 0 : index
    %c0_157 = arith.constant 0 : index
    %373 = vector.load %arg2[%c7_155, %c0_156, %c0_157] : memref<9x192x64xbf16, #tpu.memory_space<vmem>>, vector<1x192x64xbf16>
    %374 = vector.shape_cast %373 : vector<1x192x64xbf16> to vector<192x64xbf16>
    %cst_158 = arith.constant dense<0.000000e+00> : vector<8x64xf32>
    %375 = tpu.matmul %372, %374, %cst_158 {dimension_numbers = #tpu.dot_dimension_numbers<[1], [0], [0], [1], [0, 0, 1, 1], [], []>} : vector<8x192xbf16>, vector<192x64xbf16>, vector<8x64xf32> -> vector<8x64xf32>
    %376 = tpu.iota {dimensions = array<i32: 0>} : vector<8x1xi32>
    %c4_i32 = arith.constant 4 : i32
    %c0_i32_159 = arith.constant 0 : i32
    %377 = arith.cmpi eq, %c4_i32, %c0_i32_159 : i32
    %c1_i32_160 = arith.constant 1 : i32
    %378 = arith.select %377, %c1_i32_160, %c4_i32 : i32
    %379 = vector.broadcast %378 : i32 to vector<8x1xi32>
    %380 = arith.remsi %376, %379 : vector<8x1xi32>
    %c0_i32_161 = arith.constant 0 : i32
    %381 = vector.broadcast %c0_i32_161 : i32 to vector<8x1xi32>
    %382 = arith.cmpi ne, %380, %381 : vector<8x1xi32>
    %c0_i32_162 = arith.constant 0 : i32
    %383 = vector.broadcast %c0_i32_162 : i32 to vector<8x1xi32>
    %384 = arith.cmpi slt, %380, %383 : vector<8x1xi32>
    %c0_i32_163 = arith.constant 0 : i32
    %385 = arith.cmpi slt, %378, %c0_i32_163 : i32
    %386 = vector.broadcast %385 : i1 to vector<8x1xi1>
    %387 = vector.broadcast %386 : vector<8x1xi1> to vector<8x1xi1>
    %388 = arith.xori %384, %387 : vector<8x1xi1>
    %389 = arith.andi %388, %382 : vector<8x1xi1>
    %390 = vector.broadcast %378 : i32 to vector<8x1xi32>
    %391 = arith.addi %380, %390 : vector<8x1xi32>
    %392 = arith.select %389, %391, %380 : vector<8x1xi1>, vector<8x1xi32>
    %c0_i32_164 = arith.constant 0 : i32
    %393 = vector.broadcast %c0_i32_164 : i32 to vector<8x1xi32>
    %394 = arith.cmpi ne, %392, %393 : vector<8x1xi32>
    %c1_i32_165 = arith.constant 1 : i32
    %395 = tpu.dynamic_rotate %371 by %c1_i32_165 dim 0 : vector<8x64xf32>, i32 -> vector<8x64xf32>
    %cst_166 = arith.constant 0.000000e+00 : f32
    %396 = vector.shape_cast %394 : vector<8x1xi1> to vector<8x1xi1>
    %397 = vector.broadcast %396 : vector<8x1xi1> to vector<8x64xi1>
    %398 = vector.broadcast %cst_166 : f32 to vector<8x64xf32>
    %399 = arith.select %397, %395, %398 : vector<8x64xi1>, vector<8x64xf32>
    %c4_i32_167 = arith.constant 4 : i32
    %c0_i32_168 = arith.constant 0 : i32
    %400 = arith.cmpi eq, %c4_i32_167, %c0_i32_168 : i32
    %c1_i32_169 = arith.constant 1 : i32
    %401 = arith.select %400, %c1_i32_169, %c4_i32_167 : i32
    %402 = vector.broadcast %401 : i32 to vector<8x1xi32>
    %403 = arith.remsi %376, %402 : vector<8x1xi32>
    %c0_i32_170 = arith.constant 0 : i32
    %404 = vector.broadcast %c0_i32_170 : i32 to vector<8x1xi32>
    %405 = arith.cmpi ne, %403, %404 : vector<8x1xi32>
    %c0_i32_171 = arith.constant 0 : i32
    %406 = vector.broadcast %c0_i32_171 : i32 to vector<8x1xi32>
    %407 = arith.cmpi slt, %403, %406 : vector<8x1xi32>
    %c0_i32_172 = arith.constant 0 : i32
    %408 = arith.cmpi slt, %401, %c0_i32_172 : i32
    %409 = vector.broadcast %408 : i1 to vector<8x1xi1>
    %410 = vector.broadcast %409 : vector<8x1xi1> to vector<8x1xi1>
    %411 = arith.xori %407, %410 : vector<8x1xi1>
    %412 = arith.andi %411, %405 : vector<8x1xi1>
    %413 = vector.broadcast %401 : i32 to vector<8x1xi32>
    %414 = arith.addi %403, %413 : vector<8x1xi32>
    %415 = arith.select %412, %414, %403 : vector<8x1xi1>, vector<8x1xi32>
    %c3_i32 = arith.constant 3 : i32
    %416 = vector.broadcast %c3_i32 : i32 to vector<8x1xi32>
    %417 = arith.cmpi ne, %415, %416 : vector<8x1xi32>
    %c7_i32_173 = arith.constant 7 : i32
    %418 = tpu.dynamic_rotate %371 by %c7_i32_173 dim 0 : vector<8x64xf32>, i32 -> vector<8x64xf32>
    %cst_174 = arith.constant 0.000000e+00 : f32
    %419 = vector.shape_cast %417 : vector<8x1xi1> to vector<8x1xi1>
    %420 = vector.broadcast %419 : vector<8x1xi1> to vector<8x64xi1>
    %421 = vector.broadcast %cst_174 : f32 to vector<8x64xf32>
    %422 = arith.select %420, %418, %421 : vector<8x64xi1>, vector<8x64xf32>
    %423 = tpu.concatenate %399, %371, %422 in 1 : vector<8x64xf32>, vector<8x64xf32>, vector<8x64xf32> -> vector<8x192xf32>
    %424 = arith.truncf %423 : vector<8x192xf32> to vector<8x192xbf16>
    %c8_175 = arith.constant 8 : index
    %c0_176 = arith.constant 0 : index
    %c0_177 = arith.constant 0 : index
    %425 = vector.load %arg2[%c8_175, %c0_176, %c0_177] : memref<9x192x64xbf16, #tpu.memory_space<vmem>>, vector<1x192x64xbf16>
    %426 = vector.shape_cast %425 : vector<1x192x64xbf16> to vector<192x64xbf16>
    %cst_178 = arith.constant dense<0.000000e+00> : vector<8x64xf32>
    %427 = tpu.matmul %424, %426, %cst_178 {dimension_numbers = #tpu.dot_dimension_numbers<[1], [0], [0], [1], [0, 0, 1, 1], [], []>} : vector<8x192xbf16>, vector<192x64xbf16>, vector<8x64xf32> -> vector<8x64xf32>
    %428 = arith.addf %375, %427 : vector<8x64xf32>
    %c12 = arith.constant 12 : index
    %c0_179 = arith.constant 0 : index
    %429 = vector.load %arg3[%c12, %c0_179] : memref<14x64xf32, #tpu.memory_space<vmem>>, vector<1x64xf32>
    %c13 = arith.constant 13 : index
    %c0_180 = arith.constant 0 : index
    %430 = vector.load %arg3[%c13, %c0_180] : memref<14x64xf32, #tpu.memory_space<vmem>>, vector<1x64xf32>
    %431 = vector.broadcast %429 : vector<1x64xf32> to vector<8x64xf32>
    %432 = arith.mulf %428, %431 : vector<8x64xf32>
    %433 = vector.broadcast %430 : vector<1x64xf32> to vector<8x64xf32>
    %434 = arith.addf %432, %433 : vector<8x64xf32>
    %cst_181 = arith.constant 0.000000e+00 : f32
    %435 = vector.broadcast %cst_181 : f32 to vector<8x64xf32>
    %436 = arith.maximumf %434, %435 : vector<8x64xf32>
    %c0_182 = arith.constant 0 : index
    %c0_183 = arith.constant 0 : index
    %437 = vector.load %arg6[%c0_182, %c0_183] : memref<2x8xf32, #tpu.memory_space<vmem>>, vector<2x8xf32>
    %cst_184 = arith.constant dense<0.000000e+00> : vector<2x64xf32>
    %438 = tpu.matmul %437, %436, %cst_184 {dimension_numbers = #tpu.dot_dimension_numbers<[1], [0], [0], [1], [0, 0, 1, 1], [], []>} : vector<2x8xf32>, vector<8x64xf32>, vector<2x64xf32> -> vector<2x64xf32>
    %439 = arith.truncf %438 : vector<2x64xf32> to vector<2x64xbf16>
    %c0_185 = arith.constant 0 : index
    %c0_186 = arith.constant 0 : index
    %440 = vector.load %arg7[%c0_185, %c0_186] : memref<64x128xbf16, #tpu.memory_space<vmem>>, vector<64x128xbf16>
    %cst_187 = arith.constant dense<0.000000e+00> : vector<2x128xf32>
    %441 = tpu.matmul %439, %440, %cst_187 {dimension_numbers = #tpu.dot_dimension_numbers<[1], [0], [0], [1], [0, 0, 1, 1], [], []>} : vector<2x64xbf16>, vector<64x128xbf16>, vector<2x128xf32> -> vector<2x128xf32>
    %c0_188 = arith.constant 0 : index
    %c0_189 = arith.constant 0 : index
    %442 = vector.load %arg8[%c0_188, %c0_189] : memref<1x128xf32, #tpu.memory_space<vmem>>, vector<1x128xf32>
    %443 = vector.broadcast %442 : vector<1x128xf32> to vector<2x128xf32>
    %444 = arith.addf %441, %443 : vector<2x128xf32>
    %c0_190 = arith.constant 0 : index
    %c0_191 = arith.constant 0 : index
    %c0_192 = arith.constant 0 : index
    %445 = vector.load %arg9[%c0_190, %c0_191, %c0_192] : memref<1x2x128xf32, #tpu.memory_space<vmem>>, vector<1x2x128xf32>
    %446 = vector.shape_cast %445 : vector<1x2x128xf32> to vector<2x128xf32>
    %447 = vector.shape_cast %444 : vector<2x128xf32> to vector<1x2x128xf32>
    tpu.vector_store %arg9[%c0_190, %c0_191, %c0_192], %447 {strides = array<i32>} : memref<1x2x128xf32, #tpu.memory_space<vmem>>, vector<1x2x128xf32>,
    return
  }
  func.func @transform_0(%arg0: i32) -> (i32, i32, i32) {
    %c0_i32 = arith.constant 0 : i32
    %c0_i32_0 = arith.constant 0 : i32
    %c0_i32_1 = arith.constant 0 : i32
    return %arg0, %c0_i32, %c0_i32_0 : i32, i32, i32
  }
  func.func @transform_1(%arg0: i32) -> (i32, i32, i32) {
    %c0_i32 = arith.constant 0 : i32
    %c0_i32_0 = arith.constant 0 : i32
    %c0_i32_1 = arith.constant 0 : i32
    %c0_i32_2 = arith.constant 0 : i32
    return %c0_i32, %c0_i32_0, %c0_i32_1 : i32, i32, i32
  }
  func.func @transform_2(%arg0: i32) -> (i32, i32) {
    %c0_i32 = arith.constant 0 : i32
    %c0_i32_0 = arith.constant 0 : i32
    %c0_i32_1 = arith.constant 0 : i32
    return %c0_i32, %c0_i32_0 : i32, i32
  }
  func.func @transform_3(%arg0: i32) -> (i32, i32) {
    %c0_i32 = arith.constant 0 : i32
    %c0_i32_0 = arith.constant 0 : i32
    %c0_i32_1 = arith.constant 0 : i32
    return %c0_i32, %c0_i32_0 : i32, i32
  }
  func.func @transform_4(%arg0: i32) -> (i32, i32) {
    %c0_i32 = arith.constant 0 : i32
    %c0_i32_0 = arith.constant 0 : i32
    %c0_i32_1 = arith.constant 0 : i32
    return %c0_i32, %c0_i32_0 : i32, i32
  }
  func.func @transform_5(%arg0: i32) -> (i32, i32) {
    %c0_i32 = arith.constant 0 : i32
    %c0_i32_0 = arith.constant 0 : i32
    %c0_i32_1 = arith.constant 0 : i32
    return %c0_i32, %c0_i32_0 : i32, i32
  }
  func.func @transform_6(%arg0: i32) -> (i32, i32) {
    %c0_i32 = arith.constant 0 : i32
    %c0_i32_0 = arith.constant 0 : i32
    %c0_i32_1 = arith.constant 0 : i32
    return %c0_i32, %c0_i32_0 : i32, i32
  }
  func.func @transform_7(%arg0: i32) -> (i32, i32) {
    %c0_i32 = arith.constant 0 : i32
    %c0_i32_0 = arith.constant 0 : i32
    %c0_i32_1 = arith.constant 0 : i32
    return %c0_i32, %c0_i32_0 : i32, i32
  }
  func.func @transform_8(%arg0: i32) -> (i32, i32, i32) {
    %c0_i32 = arith.constant 0 : i32
    %c0_i32_0 = arith.constant 0 : i32
    %c0_i32_1 = arith.constant 0 : i32
    return %arg0, %c0_i32, %c0_i32_0 : i32, i32, i32
  }
}

</mosaic_0001>

<bundles_post_ra>
// kernel: pallas_forward.1
= control target key start
LH: loop header
LB: loop body
LE: loop exit
PB: predicated region body
PF: predicated region fallthrough
CT: control target
= control target key end

     0   :  { %v35_v3 = vlaneseq  ;;  %v2711_v6 = vmov 0   ;;  %s2712_s15 = smov 64   ;;  %vm154_vm3 = vcmask 523264   ;;  %s3533_s0 = inlined_call_operand.vmem [shape: f32[1,32,64], index: 0, kind: input, shape index: {}]   ;;  %s3534_s1 = inlined_call_operand.vmem [shape: bf16[9,192,64], index: 1, kind: input, shape index: {}]   ;;  %s3535_s2 = inlined_call_operand.vmem [shape: f32[14,64], index: 2, kind: input, shape index: {}]   ;;  %s3536_s3 = inlined_call_operand.vmem [shape: f32[16,32], index: 3, kind: input, shape index: {}]   ;;  %s3537_s4 = inlined_call_operand.vmem [shape: f32[8,16], index: 4, kind: input, shape index: {}]   ;;  %s3538_s5 = inlined_call_operand.vmem [shape: f32[2,8], index: 5, kind: input, shape index: {}]   ;;  %s3539_s6 = inlined_call_operand.vmem [shape: bf16[64,128], index: 6, kind: input, shape index: {}]   ;;  %s3540_s7 = inlined_call_operand.vmem [shape: f32[1,128], index: 7, kind: input, shape index: {}]   ;;  %s3541_s8 = inlined_call_operand.hbm [shape: f32[1,2,128], index: 8, kind: output, shape index: {}]  }
   0x1   :  { %v31_v0 = vld [vmem:[%s3533_s0] sm:$0xff]  ;;  %v32_v1 = vld [vmem:[%s3533_s0 + $0x8] sm:$0xff]  ;;  %v33_v2 = vld [vmem:[%s3533_s0 + $0x10] sm:$0xff]  ;;  %265 = vmatprep.subr.bf16.mxu0 %v2711_v6  ;;  %487 = vmatprep.subr.bf16.mxu1 %v2711_v6 }
   0x2   :  { %v2542_v4 = vpack.i.bf16 %v32_v1, %v31_v0  ;;  %v34_v5 = vld [vmem:[%s3533_s0 + $0x18] sm:$0xff]  ;;  %v93_v7 = vrot.slane %v32_v1, 7  ;;  %v118_v8 = vrot.slane %v32_v1, 1  ;;  %v92_v9 = vrot.slane %v31_v0, 7  ;;  %v2578_v14 = vld [vmem:[%s3534_s1 + $0x30] sm:$0xff]   ;;  %v2579_v20 = vld [vmem:[%s3534_s1 + $0x28] sm:$0xff]  }
   0x3   :  { %v2577_v10 = vld [vmem:[%s3534_s1 + $0x38] sm:$0xff]   ;;  %v95_v11 = vrot.slane %v34_v5, 7  ;;  %v2547_v12 = vpack.i.bf16 %v34_v5, %v33_v2  ;;  %v94_v13 = vrot.slane %v33_v2, 7  ;;  %v2782_v15 = vshrl.u32 %v35_v3, 7  ;;  %v2580_v32 = vld [vmem:[%s3534_s1 + $0x20] sm:$0xff]   ;;  %v2582_v38 = vld [vmem:[%s3534_s1 + $0x10] sm:$0xff]  }
   0x4   :  { %2543 = vrot.lane.b32.xlu0 %v2542_v4, %s2712_s15  ;;  %266 = vmatpush1.bf16.msra.mxu0 %v2577_v10  ;;  %v117_v16 = vrot.slane %v31_v0, 1  ;;  %v120_v17 = vrot.slane %v34_v5, 1  ;;  %v119_v19 = vrot.slane %v33_v2, 1  ;;  %v2581_v35 = vld [vmem:[%s3534_s1 + $0x18] sm:$0xff]   ;;  %v2583_v41 = vld [vmem:[%s3534_s1 + $0x8] sm:$0xff]   ;;  %v2584_v42 = vld [vmem:[%s3534_s1] sm:$0xff]  }
   0x5   :  { %267 = vmatprep.subr.bf16.mxu0 %v2711_v6  ;;  %v2786_v18 = vadd.s32 8, %v2782_v15  ;;  %vm96_vm0 = vcmp.lt.s32.totalorder %v2782_v15, 1  ;;  %vm121_vm1 = vcmp.lt.s32.totalorder %v2782_v15, 7  ;;  %v39_v34 = vadd.s32 24, %v2782_v15  ;;  %v2585_v43 = vld [vmem:[%s3534_s1 + $0x58] sm:$0xff]   ;;  %v2586_v44 = vld [vmem:[%s3534_s1 + $0x50] sm:$0xff]  }
   0x6   :  { %v99_v22 = vsel %vm96_vm0, %v92_v9, %v93_v7  ;;  %v100_v23 = vsel %vm96_vm0, %v95_v11, %v92_v9  ;;  %v2800_v24 = vsel %vm96_vm0, %v94_v13, %v95_v11  ;;  %v2806_v25 = vsel %vm96_vm0, %v93_v7, %v94_v13  ;;  %v2587_v45 = vld [vmem:[%s3534_s1 + $0x48] sm:$0xff]   ;;  %v2588_v46 = vld [vmem:[%s3534_s1 + $0x40] sm:$0xff]  }
   0x7   :  { %v51_v21 = vand.u32 15, %v2786_v18  ;;  %v123_v27 = vsel %vm121_vm1, %v118_v8, %v119_v19  ;;  %v124_v28 = vsel %vm121_vm1, %v117_v16, %v118_v8  ;;  %v122_v29 = vsel %vm121_vm1, %v119_v19, %v120_v17 }
   0x8   :  { %2548 = vrot.lane.b32.xlu0 %v2547_v12, %s2712_s15  ;;  %268 = vmatpush1.bf16.msra.mxu0 %v2578_v14  ;;  %v125_v31 = vsel %vm121_vm1, %v120_v17, %v117_v16  ;;  %v65_v36 = vand.u32 15, %v39_v34 }
   0x9   :  { %269 = vmatprep.subr.bf16.mxu0 %v2711_v6  ;;  %vm2808_vm2 = vcmp.ne.s32.totalorder %v51_v21, 15 }
   0xa   :  { %v135_v30 = vsel %vm2808_vm2, %v123_v27, 0.0  ;;  %vm2832_vm4 = vcmp.ne.s32.totalorder %v65_v36, 15 }
   0xb   :  { %v160_v33 = vpack.c.bf16 %v135_v30, %v124_v28  ;;  %v137_v39 = vsel %vm2832_vm4, %v125_v31, 0.0 }
   0xc   :  { %270 = vmatpush1.bf16.msra.mxu0 %v2579_v20  ;;  %v162_v40 = vpack.c.bf16 %v137_v39, %v122_v29 }
   0xd   :  { %271 = vmatprep.subr.bf16.mxu0 %v2711_v6  ;;  %2185 = vmatprep.mubr.msk.bf16.mxu0 %vm154_vm3, %v160_v33 }
  0x10   :  { %272 = vmatpush1.bf16.msra.mxu0 %v2580_v32 }
  0x11   :  { %273 = vmatprep.subr.bf16.mxu0 %v2711_v6 }
  0x14   :  { %274 = vmatpush1.bf16.msra.mxu0 %v2581_v35 }
  0x15   :  { %275 = vmatprep.subr.bf16.mxu0 %v2711_v6 }
  0x18   :  { %276 = vmatpush1.bf16.msra.mxu0 %v2582_v38 }
  0x19   :  { %277 = vmatprep.subr.bf16.mxu0 %v2711_v6 }
  0x1c   :  { %278 = vmatpush1.bf16.msra.mxu0 %v2583_v41 }
  0x1d   :  { %279 = vmatprep.subr.bf16.mxu0 %v2711_v6 }
  0x20   :  { %280 = vmatpush1.bf16.msra.mxu0 %v2584_v42 }
  0x21   :  { %289 = vmatprep.subr.bf16.mxu0 %v2711_v6 }
  0x24   :  { %290 = vmatpush2.bf16.msra.mxu0 %v2585_v43 }
  0x25   :  { %291 = vmatprep.subr.bf16.mxu0 %v2711_v6 }
  0x28   :  { %292 = vmatpush2.bf16.msra.mxu0 %v2586_v44 }
  0x29   :  { %293 = vmatprep.subr.bf16.mxu0 %v2711_v6 }
  0x2c   :  { %294 = vmatpush2.bf16.msra.mxu0 %v2587_v45 }
  0x2d   :  { %295 = vmatprep.subr.bf16.mxu0 %v2711_v6 }
  0x30   :  { %296 = vmatpush2.bf16.msra.mxu0 %v2588_v46 }
  0x31   :  { %709 = vmatprep.subr.bf16.mxu0 %v2711_v6 }
  0x32   :  { %13 = vsyncpa [#allocation3], 0  ;;  %v44_v47 = vand.u32 15, %v2782_v15  ;;  %v38_v48 = vadd.s32 16, %v2782_v15  ;;  %v2589_v2 = vld [vmem:[%s3534_s1 + $0x98] sm:$0xff]   ;;  %v2590_v3 = vld [vmem:[%s3534_s1 + $0x90] sm:$0xff]  }
  0x33   :  { %488 = vmatpush1.bf16.msra.mxu1 %v2589_v2  ;;  %v2591_v4 = vld [vmem:[%s3534_s1 + $0x88] sm:$0xff]   ;;  %v2592_v5 = vld [vmem:[%s3534_s1 + $0x80] sm:$0xff]   ;;  %v2593_v7 = vld [vmem:[%s3534_s1 + $0x78] sm:$0xff]   ;;  %vm830_vm7 = vcmask 261120   ;;  %vm1451_vm12 = vcmask 130048   ;;  %vm2714_vm15 = vmmov 0  }
  0x34   :  { %vm2869_vm5 = vcmp.ne.s32.totalorder %v44_v47, 0  ;;  %v58_v50 = vand.u32 15, %v38_v48  ;;  %489 = vmatprep.subr.bf16.mxu1 %v2711_v6  ;;  %v2594_v8 = vld [vmem:[%s3534_s1 + $0x70] sm:$0xff]   ;;  %v2595_v9 = vld [vmem:[%s3534_s1 + $0x68] sm:$0xff]   ;;  %v2596_v10 = vld [vmem:[%s3534_s1 + $0x60] sm:$0xff]   ;;  %s2715_s19 = smov [#allocation2]  }
  0x35   :  { %v109_v52 = vsel %vm2869_vm5, %v100_v23, 0.0  ;;  %v2597_v11 = vld [vmem:[%s3534_s1 + $0xb8] sm:$0xff]   ;;  %v2598_v12 = vld [vmem:[%s3534_s1 + $0xb0] sm:$0xff]   ;;  %v2599_v13 = vld [vmem:[%s3534_s1 + $0xa8] sm:$0xff]   ;;  %s2165_s20 = sshll.u32 %s2715_s19, 4  ;;  %s2166_s20 = int_to_ptr.vmem [resolvable:$true] %s2165_s20 }
  0x36   :  { %vm2875_vm6 = vcmp.ne.s32.totalorder %v58_v50, 0  ;;  %v2187_v14 = vld [vmem:[%s3535_s2] ss:$0 sm:$0xff]  ;;  %v2188_v17 = vld [vmem:[%s3535_s2 + $0x1] ss:$0 sm:$0xff]  ;;  %v785_v26 = vld [vmem:[%s3536_s3 + $0x8] sm:$0xff]  ;;  %p2694_p1 = scmp.lt.s32.totalorder %s2166_s20, %s2166_s20 }
  0x37   :  { %v111_v60 = vsel %vm2875_vm6, %v2806_v25, 0.0  ;;  %490 = vmatpush1.bf16.msra.mxu1 %v2590_v3  ;;  %v2600_v19 = vld [vmem:[%s3534_s1 + $0xa0] sm:$0xff]   ;;  %v2614_v49 = vld [vmem:[%s3534_s1 + $0x150] sm:$0xff]  }
  0x38   :  { %491 = vmatprep.subr.bf16.mxu1 %v2711_v6  ;;  %v784_v55 = vld [vmem:[%s3536_s3] sm:$0xff]  ;;  %s2689_s3 = scalar_lea.vmem %s2166_s20, 32 }
  0x39   :  { %p2690_p0 = scmp.ne.s32.totalorder %s2166_s20, %s2689_s3  ;;  %p2695_p2 = scmp.lt.s32.totalorder %s2689_s3, %s2689_s3 }
  0x3b   :  { %492 = vmatpush1.bf16.msra.mxu1 %v2591_v4  ;;  %p2696_p3 = por %p2695_p2, %p2694_p1 }
  0x3c   :  { %493 = vmatprep.subr.bf16.mxu1 %v2711_v6 }
  0x3d   :  { %p2697_p4 = pnand %p2696_p3, %p2690_p0 }
  0x3f   :  { %494 = vmatpush1.bf16.msra.mxu1 %v2592_v5 }
  0x40   :  { %495 = vmatprep.subr.bf16.mxu1 %v2711_v6 }
  0x43   :  { %496 = vmatpush1.bf16.msra.mxu1 %v2593_v7 }
  0x44   :  { %497 = vmatprep.subr.bf16.mxu1 %v2711_v6 }
  0x47   :  { %498 = vmatpush1.bf16.msra.mxu1 %v2594_v8 }
  0x48   :  { %499 = vmatprep.subr.bf16.mxu1 %v2711_v6 }
  0x4b   :  { %500 = vmatpush1.bf16.msra.mxu1 %v2595_v9 }
  0x4c   :  { %501 = vmatprep.subr.bf16.mxu1 %v2711_v6 }
  0x4f   :  { %502 = vmatpush1.bf16.msra.mxu1 %v2596_v10 }
  0x50   :  { %511 = vmatprep.subr.bf16.mxu1 %v2711_v6 }
  0x53   :  { %512 = vmatpush2.bf16.msra.mxu1 %v2597_v11 }
  0x54   :  { %513 = vmatprep.subr.bf16.mxu1 %v2711_v6 }
  0x57   :  { %514 = vmatpush2.bf16.msra.mxu1 %v2598_v12 }
  0x58   :  { %515 = vmatprep.subr.bf16.mxu1 %v2711_v6 }
  0x5b   :  { %516 = vmatpush2.bf16.msra.mxu1 %v2599_v13 }
  0x5c   :  { %517 = vmatprep.subr.bf16.mxu1 %v2711_v6 }
  0x5f   :  { %518 = vmatpush2.bf16.msra.mxu1 %v2600_v19  ;;  %v2601_v19 = vld [vmem:[%s3534_s1 + $0xf8] sm:$0xff]  }
  0x76   :  { %v2544_v51 = vpop.permute.xlu0 %2543 }
  0x77   :  { %v2546_v53 = vunpack.i.h.bf16 %v2544_v51  ;;  %v2545_v54 = vunpack.i.l.bf16 %v2544_v51 }
  0x79   :  { %v155_v56 = vsel %vm154_vm3, %v109_v52, %v2545_v54  ;;  %v156_v57 = vsel %vm154_vm3, %v99_v22, %v2546_v53 }
  0x7a   :  { %v159_v58 = vpack.c.bf16 %v156_v57, %v155_v56  ;;  %v2549_v59 = vpop.permute.xlu0 %2548 }
  0x7b   :  { %v2551_v61 = vunpack.i.h.bf16 %v2549_v59  ;;  %v2550_v62 = vunpack.i.l.bf16 %v2549_v59 }
  0x7c   :  { %298 = vmatmul.mubr.bf16.vlgmr.msra.gmra.mxu0 %v159_v58 }
  0x7d   :  { %2186 = vmatprep.mubr.msk.bf16.mxu0 %vm154_vm3, %v162_v40  ;;  %v157_v63 = vsel %vm154_vm3, %v111_v60, %v2550_v62  ;;  %v158_v0 = vsel %vm154_vm3, %v2800_v24, %v2551_v61  ;;  %710 = vmatpush1.bf16.msra.mxu0 %v2601_v19 }
  0x7e   :  { %v161_v1 = vpack.c.bf16 %v158_v0, %v157_v63  ;;  %711 = vmatprep.subr.bf16.mxu0 %v2711_v6 }
  0x84   :  { %306 = vmatmul.mubr.bf16.gmra.mxu0 %v161_v1 }
 0x13c   :  { %v2935_v16 = vpop.f32.mrf.mxu0 }
 0x13d   :  { %v320_v20 = vmul.f32 %v2187_v14, %v2935_v16 }
 0x13e   :  { %v301_v21 = vpop.f32.mrf.mxu0 }
 0x13f   :  { %v328_v22 = vadd.f32 %v2188_v17, %v320_v20  ;;  %v2602_v20 = vld [vmem:[%s3534_s1 + $0xf0] sm:$0xff]   ;;  %v2603_v21 = vld [vmem:[%s3534_s1 + $0xe8] sm:$0xff]  }
 0x140   :  { %v2944_v23 = vpop.f32.mrf.mxu0  ;;  %712 = vmatpush1.bf16.msra.mxu0 %v2602_v20 }
 0x141   :  { %v321_v24 = vmul.f32 %v2187_v14, %v2944_v23  ;;  %v332_v27 = vmax.f32 %v328_v22, 0.0  ;;  %713 = vmatprep.subr.bf16.mxu0 %v2711_v6  ;;  %v2604_v22 = vld [vmem:[%s3534_s1 + $0xe0] sm:$0xff]  }
 0x142   :  { %v304_v25 = vpop.f32.mrf.mxu0 }
 0x143   :  { %v329_v28 = vadd.f32 %v2188_v17, %v321_v24  ;;  %v336_v33 = vrot.slane %v332_v27, 7  ;;  %v348_v47 = vrot.slane %v332_v27, 1  ;;  %v2605_v24 = vld [vmem:[%s3534_s1 + $0xd8] sm:$0xff]   ;;  %v2606_v25 = vld [vmem:[%s3534_s1 + $0xd0] sm:$0xff]  }
 0x144   :  { %v2947_v29 = vpop.f32.mrf.mxu0  ;;  %714 = vmatpush1.bf16.msra.mxu0 %v2603_v21 }
 0x145   :  { %v333_v30 = vmax.f32 %v329_v28, 0.0  ;;  %v322_v31 = vmul.f32 %v2187_v14, %v2947_v29  ;;  %715 = vmatprep.subr.bf16.mxu0 %v2711_v6  ;;  %v2608_v28 = vld [vmem:[%s3534_s1 + $0xc0] sm:$0xff]  }
 0x146   :  { %v309_v32 = vpop.f32.mrf.mxu0 }
 0x147   :  { %v337_v34 = vrot.slane %v333_v30, 7  ;;  %v330_v35 = vadd.f32 %v2188_v17, %v322_v31  ;;  %v2552_v36 = vpack.i.bf16 %v333_v30, %v332_v27  ;;  %v349_v43 = vrot.slane %v333_v30, 1  ;;  %v2607_v27 = vld [vmem:[%s3534_s1 + $0xc8] sm:$0xff]   ;;  %v2609_v30 = vld [vmem:[%s3534_s1 + $0x118] sm:$0xff]   ;;  %v2610_v31 = vld [vmem:[%s3534_s1 + $0x110] sm:$0xff]  }
 0x148   :  { %v2950_v38 = vpop.f32.mrf.mxu0  ;;  %716 = vmatpush1.bf16.msra.mxu0 %v2604_v22  ;;  %v2611_v32 = vld [vmem:[%s3534_s1 + $0x108] sm:$0xff]  }
 0x149   :  { %v334_v39 = vmax.f32 %v330_v35, 0.0  ;;  %v323_v40 = vmul.f32 %v2187_v14, %v2950_v38  ;;  %2553 = vrot.lane.b32.xlu1 %v2552_v36, %s2712_s15  ;;  %v342_v41 = vsel %vm96_vm0, %v336_v33, %v337_v34  ;;  %v354_v52 = vsel %vm121_vm1, %v348_v47, %v349_v43  ;;  %717 = vmatprep.subr.bf16.mxu0 %v2711_v6  ;;  %v2228_v35 = vld [vmem:[%s3535_s2 + $0x3] ss:$0 sm:$0xff] }
 0x14a   :  { %v312_v42 = vpop.f32.mrf.mxu0 }
 0x14b   :  { %v338_v44 = vrot.slane %v334_v39, 7  ;;  %v331_v45 = vadd.f32 %v2188_v17, %v323_v40  ;;  %v350_v46 = vrot.slane %v334_v39, 1 }
 0x14c   :  { %718 = vmatpush1.bf16.msra.mxu0 %v2605_v24 }
 0x14d   :  { %v335_v48 = vmax.f32 %v331_v45, 0.0  ;;  %v353_v50 = vsel %vm121_vm1, %v349_v43, %v350_v46  ;;  %v341_v51 = vsel %vm96_vm0, %v337_v34, %v338_v44  ;;  %719 = vmatprep.subr.bf16.mxu0 %v2711_v6 }
 0x14e   :  { %v357_v53 = vsel %vm2808_vm2, %v353_v50, 0.0  ;;  %v346_v12 = vsel %vm2875_vm6, %v341_v51, 0.0 }
 0x14f   :  { %v339_v54 = vrot.slane %v335_v48, 7  ;;  %v351_v56 = vrot.slane %v335_v48, 1  ;;  %v381_v57 = vpack.c.bf16 %v357_v53, %v354_v52  ;;  %v2557_v58 = vpack.i.bf16 %v335_v48, %v334_v39  ;;  %v2612_v39 = vld [vmem:[%s3534_s1 + $0x100] sm:$0xff]  }
 0x150   :  { %720 = vmatpush1.bf16.msra.mxu0 %v2606_v25 }
 0x151   :  { %2225 = vmatprep.mubr.msk.bf16.mxu1 %vm154_vm3, %v381_v57  ;;  %2558 = vrot.lane.b32.xlu1 %v2557_v58, %s2712_s15  ;;  %v343_v59 = vsel %vm96_vm0, %v339_v54, %v336_v33  ;;  %v352_v60 = vsel %vm121_vm1, %v350_v46, %v351_v56  ;;  %v355_v61 = vsel %vm121_vm1, %v351_v56, %v348_v47  ;;  %v2227_v33 = vld [vmem:[%s3535_s2 + $0x2] ss:$0 sm:$0xff] }
 0x152   :  { %v359_v62 = vsel %vm2832_vm4, %v355_v61, 0.0  ;;  %v340_v63 = vsel %vm96_vm0, %v338_v44, %v339_v54  ;;  %v344_v4 = vsel %vm2869_vm5, %v343_v59, 0.0  ;;  %721 = vmatprep.subr.bf16.mxu0 %v2711_v6 }
 0x153   :  { %v383_v0 = vpack.c.bf16 %v359_v62, %v352_v60 }
 0x154   :  { %722 = vmatpush1.bf16.msra.mxu0 %v2607_v27 }
 0x155   :  { %723 = vmatprep.subr.bf16.mxu0 %v2711_v6 }
 0x158   :  { %724 = vmatpush1.bf16.msra.mxu0 %v2608_v28 }
 0x159   :  { %733 = vmatprep.subr.bf16.mxu0 %v2711_v6 }
 0x15c   :  { %734 = vmatpush2.bf16.msra.mxu0 %v2609_v30 }
 0x15d   :  { %735 = vmatprep.subr.bf16.mxu0 %v2711_v6 }
 0x160   :  { %736 = vmatpush2.bf16.msra.mxu0 %v2610_v31 }
 0x161   :  { %737 = vmatprep.subr.bf16.mxu0 %v2711_v6 }
 0x164   :  { %738 = vmatpush2.bf16.msra.mxu0 %v2611_v32 }
 0x165   :  { %739 = vmatprep.subr.bf16.mxu0 %v2711_v6 }
 0x168   :  { %740 = vmatpush2.bf16.msra.mxu0 %v2612_v39 }
 0x169   :  { %1258 = vmatprep.subr.bf16.mxu0 %v2711_v6 }
 0x1bb   :  { %v2554_v1 = vpop.permute.xlu1 %2553 }
 0x1bc   :  { %v2556_v2 = vunpack.i.h.bf16 %v2554_v1  ;;  %v2555_v3 = vunpack.i.l.bf16 %v2554_v1 }
 0x1be   :  { %v376_v5 = vsel %vm154_vm3, %v344_v4, %v2555_v3  ;;  %v377_v7 = vsel %vm154_vm3, %v342_v41, %v2556_v2 }
 0x1bf   :  { %v380_v8 = vpack.c.bf16 %v377_v7, %v376_v5 }
 0x1c1   :  { %520 = vmatmul.mubr.bf16.vlgmr.msra.gmra.mxu1 %v380_v8 }
 0x1c2   :  { %2226 = vmatprep.mubr.msk.bf16.mxu1 %vm154_vm3, %v383_v0 }
 0x1c3   :  { %v2559_v9 = vpop.permute.xlu1 %2558 }
 0x1c4   :  { %v2561_v10 = vunpack.i.h.bf16 %v2559_v9  ;;  %v2560_v11 = vunpack.i.l.bf16 %v2559_v9 }
 0x1c6   :  { %v378_v13 = vsel %vm154_vm3, %v346_v12, %v2560_v11  ;;  %v379_v14 = vsel %vm154_vm3, %v340_v63, %v2561_v10 }
 0x1c7   :  { %v382_v17 = vpack.c.bf16 %v379_v14, %v378_v13 }
 0x1c9   :  { %528 = vmatmul.mubr.bf16.gmra.mxu1 %v382_v17 }
 0x281   :  { %v521_v34 = vpop.f32.mrf.mxu1 }
 0x282   :  { %v542_v36 = vmul.f32 %v2227_v33, %v521_v34 }
 0x283   :  { %v523_v40 = vpop.f32.mrf.mxu1 }
 0x284   :  { %v550_v41 = vadd.f32 %v2228_v35, %v542_v36 }
 0x285   :  { %v524_v42 = vpop.f32.mrf.mxu1 }
 0x286   :  { %v543_v43 = vmul.f32 %v2227_v33, %v524_v42  ;;  %v554_v45 = vmax.f32 %v550_v41, 0.0  ;;  %v2267_v42 = vld [vmem:[%s3535_s2 + $0x4] ss:$0 sm:$0xff] }
 0x287   :  { %v526_v44 = vpop.f32.mrf.mxu1 }
 0x288   :  { %v551_v46 = vadd.f32 %v2228_v35, %v543_v43  ;;  %v558_v52 = vrot.slane %v554_v45, 7  ;;  %v570_v2 = vrot.slane %v554_v45, 1 }
 0x289   :  { %v529_v47 = vpop.f32.mrf.mxu1 }
 0x28a   :  { %v555_v48 = vmax.f32 %v551_v46, 0.0  ;;  %v544_v50 = vmul.f32 %v2227_v33, %v529_v47 }
 0x28b   :  { %v531_v51 = vpop.f32.mrf.mxu1 }
 0x28c   :  { %v559_v53 = vrot.slane %v555_v48, 7  ;;  %v552_v54 = vadd.f32 %v2228_v35, %v544_v50  ;;  %v2562_v56 = vpack.i.bf16 %v555_v48, %v554_v45  ;;  %v571_v61 = vrot.slane %v555_v48, 1  ;;  %v2268_v45 = vld [vmem:[%s3535_s2 + $0x5] ss:$0 sm:$0xff] }
 0x28d   :  { %v532_v57 = vpop.f32.mrf.mxu1 }
 0x28e   :  { %v556_v58 = vmax.f32 %v552_v54, 0.0  ;;  %v545_v59 = vmul.f32 %v2227_v33, %v532_v57  ;;  %2563 = vrot.lane.b32.xlu0 %v2562_v56, %s2712_s15  ;;  %v564_v60 = vsel %vm96_vm0, %v558_v52, %v559_v53  ;;  %v576_v7 = vsel %vm121_vm1, %v570_v2, %v571_v61 }
 0x28f   :  { %v534_v62 = vpop.f32.mrf.mxu1 }
 0x290   :  { %v560_v63 = vrot.slane %v556_v58, 7  ;;  %v572_v0 = vrot.slane %v556_v58, 1  ;;  %v553_v1 = vadd.f32 %v2228_v35, %v545_v59 }
 0x292   :  { %v557_v3 = vmax.f32 %v553_v1, 0.0  ;;  %v575_v4 = vsel %vm121_vm1, %v571_v61, %v572_v0  ;;  %v563_v5 = vsel %vm96_vm0, %v559_v53, %v560_v63 }
 0x293   :  { %v579_v8 = vsel %vm2808_vm2, %v575_v4, 0.0  ;;  %v568_v35 = vsel %vm2875_vm6, %v563_v5, 0.0 }
 0x294   :  { %v561_v9 = vrot.slane %v557_v3, 7  ;;  %v573_v10 = vrot.slane %v557_v3, 1  ;;  %v603_v11 = vpack.c.bf16 %v579_v8, %v576_v7  ;;  %v2567_v12 = vpack.i.bf16 %v557_v3, %v556_v58 }
 0x296   :  { %2265 = vmatprep.mubr.msk.bf16.mxu0 %vm154_vm3, %v603_v11  ;;  %2568 = vrot.lane.b32.xlu1 %v2567_v12, %s2712_s15  ;;  %v565_v13 = vsel %vm96_vm0, %v561_v9, %v558_v52  ;;  %v574_v14 = vsel %vm121_vm1, %v572_v0, %v573_v10  ;;  %v577_v17 = vsel %vm121_vm1, %v573_v10, %v570_v2  ;;  %v2713_v10 = vmov 0.0  }
 0x297   :  { %v581_v19 = vsel %vm2832_vm4, %v577_v17, 0.0  ;;  %v562_v20 = vsel %vm96_vm0, %v560_v63, %v561_v9  ;;  %v566_v27 = vsel %vm2869_vm5, %v565_v13, 0.0  ;;  %901 = vmatprep.mubr.f32.mxu1 %v2713_v10 }
 0x298   :  { %v605_v21 = vpack.c.bf16 %v581_v19, %v574_v14 }
 0x300   :  { %v2564_v22 = vpop.permute.xlu0 %2563 }
 0x301   :  { %v2566_v24 = vunpack.i.h.bf16 %v2564_v22  ;;  %v2565_v25 = vunpack.i.l.bf16 %v2564_v22 }
 0x303   :  { %v598_v28 = vsel %vm154_vm3, %v566_v27, %v2565_v25  ;;  %v599_v30 = vsel %vm154_vm3, %v564_v60, %v2566_v24 }
 0x304   :  { %v602_v31 = vpack.c.bf16 %v599_v30, %v598_v28 }
 0x306   :  { %742 = vmatmul.mubr.bf16.vlgmr.msra.gmra.mxu0 %v602_v31 }
 0x307   :  { %2266 = vmatprep.mubr.msk.bf16.mxu0 %vm154_vm3, %v605_v21 }
 0x308   :  { %v2569_v32 = vpop.permute.xlu1 %2568 }
 0x309   :  { %v2571_v33 = vunpack.i.h.bf16 %v2569_v32  ;;  %v2570_v34 = vunpack.i.l.bf16 %v2569_v32 }
 0x30b   :  { %v600_v36 = vsel %vm154_vm3, %v568_v35, %v2570_v34  ;;  %v601_v39 = vsel %vm154_vm3, %v562_v20, %v2571_v33  ;;  %v2613_v33 = vld [vmem:[%s3534_s1 + $0x158] sm:$0xff]   ;;  %v2615_v35 = vld [vmem:[%s3534_s1 + $0x148] sm:$0xff]  }
 0x30c   :  { %v604_v40 = vpack.c.bf16 %v601_v39, %v600_v36  ;;  %v2616_v36 = vld [vmem:[%s3534_s1 + $0x140] sm:$0xff]   ;;  %v2617_v39 = vld [vmem:[%s3534_s1 + $0x138] sm:$0xff]  }
 0x30e   :  { %750 = vmatmul.mubr.bf16.gmra.mxu0 %v604_v40  ;;  %v2618_v40 = vld [vmem:[%s3534_s1 + $0x130] sm:$0xff]  }
 0x3c6   :  { %v743_v41 = vpop.f32.mrf.mxu0 }
 0x3c7   :  { %v758_v43 = vadd.f32 %v743_v41, %v2935_v16  ;;  %v2619_v41 = vld [vmem:[%s3534_s1 + $0x128] sm:$0xff]  }
 0x3c8   :  { %v745_v44 = vpop.f32.mrf.mxu0 }
 0x3c9   :  { %v768_v46 = vmul.f32 %v2267_v42, %v758_v43  ;;  %v2621_v43 = vld [vmem:[%s3534_s1 + $0x178] sm:$0xff]   ;;  %v2622_v44 = vld [vmem:[%s3534_s1 + $0x170] sm:$0xff]  }
 0x3ca   :  { %v746_v47 = vpop.f32.mrf.mxu0 }
 0x3cb   :  { %v759_v48 = vadd.f32 %v746_v47, %v2944_v23  ;;  %v776_v50 = vadd.f32 %v2268_v45, %v768_v46  ;;  %v2624_v46 = vld [vmem:[%s3534_s1 + $0x160] sm:$0xff]  }
 0x3cc   :  { %v748_v51 = vpop.f32.mrf.mxu0 }
 0x3cd   :  { %v769_v52 = vmul.f32 %v2267_v42, %v759_v48  ;;  %v780_v54 = vmax.f32 %v776_v50, 0.0 }
 0x3ce   :  { %v751_v53 = vpop.f32.mrf.mxu0 }
 0x3cf   :  { %v760_v56 = vadd.f32 %v751_v53, %v2947_v29  ;;  %v777_v57 = vadd.f32 %v2268_v45, %v769_v52  ;;  %v786_v61 = vrot.slane %v780_v54, 7  ;;  %v798_v62 = vrot.slane %v780_v54, 1  ;;  %v2625_v53 = vld [vmem:[%s3534_s1 + $0x1b8] sm:$0xff]  }
 0x3d0   :  { %v753_v58 = vpop.f32.mrf.mxu0 }
 0x3d1   :  { %v770_v59 = vmul.f32 %v2267_v42, %v760_v56  ;;  %v781_v16 = vmax.f32 %v777_v57, 0.0  ;;  %v2626_v56 = vld [vmem:[%s3534_s1 + $0x1b0] sm:$0xff]   ;;  %v2627_v57 = vld [vmem:[%s3534_s1 + $0x1a8] sm:$0xff]   ;;  %v2628_v58 = vld [vmem:[%s3534_s1 + $0x1a0] sm:$0xff]  }
 0x3d2   :  { %v754_v60 = vpop.f32.mrf.mxu0 }
 0x3d3   :  { %v761_v63 = vadd.f32 %v754_v60, %v2950_v38  ;;  %v778_v0 = vadd.f32 %v2268_v45, %v770_v59  ;;  %v787_v1 = vrot.slane %v781_v16, 7  ;;  %v799_v2 = vrot.slane %v781_v16, 1  ;;  %v2629_v59 = vld [vmem:[%s3534_s1 + $0x198] sm:$0xff]   ;;  %v2631_v60 = vld [vmem:[%s3534_s1 + $0x188] sm:$0xff]  }
 0x3d4   :  { %v756_v23 = vpop.f32.mrf.mxu0 }
 0x3d5   :  { %v771_v3 = vmul.f32 %v2267_v42, %v761_v63  ;;  %v782_v4 = vmax.f32 %v778_v0, 0.0  ;;  %v792_v5 = vsel %vm96_vm0, %v786_v61, %v787_v1  ;;  %v804_v29 = vsel %vm121_vm1, %v798_v62, %v799_v2  ;;  %v2620_v42 = vld [vmem:[%s3534_s1 + $0x120] sm:$0xff]   ;;  %v2634_v63 = vld [vmem:[%s3534_s1 + $0x1d0] sm:$0xff]   ;;  %v2635_v0 = vld [vmem:[%s3534_s1 + $0x1c8] sm:$0xff]  }
 0x3d6   :  { %v2638_v23 = vld [vmem:[%s3534_s1 + $0x210] sm:$0xff]  }
 0x3d7   :  { %818 = vrot.lane.b32.xlu1 %v782_v4, %s2712_s15  ;;  %v788_v7 = vrot.slane %v782_v4, 7  ;;  %v779_v8 = vadd.f32 %v2268_v45, %v771_v3  ;;  %v800_v9 = vrot.slane %v782_v4, 1  ;;  %v2623_v45 = vld [vmem:[%s3534_s1 + $0x168] sm:$0xff]   ;;  %v2640_v4 = vld [vmem:[%s3534_s1 + $0x200] sm:$0xff]  }
 0x3d8   :  { %v2639_v3 = vld [vmem:[%s3534_s1 + $0x208] sm:$0xff]  }
 0x3d9   :  { %v783_v38 = vmax.f32 %v779_v8, 0.0  ;;  %v791_v11 = vsel %vm96_vm0, %v787_v1, %v788_v7  ;;  %v803_v12 = vsel %vm121_vm1, %v799_v2, %v800_v9  ;;  %v2636_v1 = vld [vmem:[%s3534_s1 + $0x1c0] sm:$0xff]   ;;  %v2637_v2 = vld [vmem:[%s3534_s1 + $0x218] sm:$0xff]  }
 0x3da   :  { %v796_v27 = vsel %vm2875_vm6, %v791_v11, 0.0  ;;  %1259 = vmatpush1.bf16.msra.mxu0 %v2637_v2  ;;  %v2644_v8 = vld [vmem:[%s3534_s1 + $0x1e0] sm:$0xff]   ;;  %v2647_v11 = vld [vmem:[%s3534_s1 + $0x228] sm:$0xff]   ;;  %v2649_v2 = vld [vmem:[%s3534_s1 + $0x278] sm:$0xff]  }
 0x3db   :  { %814 = vrot.lane.b32.xlu1 %v780_v54, %s2712_s15  ;;  %820 = vrot.lane.b32.xlu0 %v783_v38, %s2712_s15  ;;  %v789_v13 = vrot.slane %v783_v38, 7  ;;  %v801_v14 = vrot.slane %v783_v38, 1  ;;  %v2646_v38 = vld [vmem:[%s3534_s1 + $0x230] sm:$0xff]  }
 0x3dc   :  { %1260 = vmatprep.subr.bf16.mxu0 %v2711_v6 }
 0x3dd   :  { %v805_v17 = vsel %vm121_vm1, %v801_v14, %v798_v62  ;;  %v793_v19 = vsel %vm96_vm0, %v789_v13, %v786_v61  ;;  %v790_v20 = vsel %vm96_vm0, %v788_v7, %v789_v13  ;;  %v802_v21 = vsel %vm121_vm1, %v800_v9, %v801_v14  ;;  %v2632_v61 = vld [vmem:[%s3534_s1 + $0x180] sm:$0xff]   ;;  %v2633_v62 = vld [vmem:[%s3534_s1 + $0x1d8] sm:$0xff]   ;;  %v2643_v7 = vld [vmem:[%s3534_s1 + $0x1e8] sm:$0xff]  }
 0x3de   :  { %2269 = vmatprep.subr.msk.mxu1 %vm2832_vm4, %v805_v17  ;;  %v794_v37 = vsel %vm2869_vm5, %v793_v19, 0.0  ;;  %1261 = vmatpush1.bf16.msra.mxu0 %v2638_v23  ;;  %v2645_v9 = vld [vmem:[%s3534_s1 + $0x238] sm:$0xff]   ;;  %v2311_v14 = vld [vmem:[%s3535_s2 + $0x7] ss:$0 sm:$0xff] }
 0x3df   :  { %816 = vrot.lane.b32.xlu0 %v781_v16, %s2712_s15  ;;  %v2630_v16 = vld [vmem:[%s3534_s1 + $0x190] sm:$0xff]   ;;  %1262 = vmatprep.subr.bf16.mxu0 %v2711_v6  ;;  %v2648_v19 = vld [vmem:[%s3534_s1 + $0x220] sm:$0xff]  }
 0x3e2   :  { %1263 = vmatpush1.bf16.msra.mxu0 %v2639_v3 }
 0x3e3   :  { %1264 = vmatprep.subr.bf16.mxu0 %v2711_v6 }
 0x3e6   :  { %1265 = vmatpush1.bf16.msra.mxu0 %v2640_v4 }
 0x3e7   :  { %1266 = vmatprep.subr.bf16.mxu0 %v2711_v6 }
 0x449   :  { %v819_v22 = vpop.permute.xlu1 %818 }
 0x44a   :  { %v828_v28 = vsel %vm154_vm3, %v796_v27, %v819_v22 }
 0x44d   :  { %v821_v24 = vpop.permute.xlu0 %820  ;;  %v815_v30 = vpop.permute.xlu1 %814 }
 0x44e   :  { %v829_v25 = vsel %vm154_vm3, %v790_v20, %v821_v24  ;;  %v826_v34 = vsel %vm154_vm3, %v794_v37, %v815_v30  ;;  %v1102_v30 = vand.u32 7, %v2782_v15 }
 0x44f   :  { %862 = vmatpush1.msra.mxu1 %v829_v25  ;;  %v1109_v25 = vand.u32 7, %v2786_v18 }
 0x450   :  { %863 = vmatprep.subr.mxu1 %v802_v21  ;;  %vm3276_vm8 = vcmp.ne.s32.totalorder %v1102_v30, 7  ;;  %vm3298_vm10 = vcmp.ne.s32.totalorder %v1102_v30, 0  ;;  %v2657_v30 = vld [vmem:[%s3534_s1 + $0x298] sm:$0xff]  }
 0x451   :  { %v817_v31 = vpop.permute.xlu0 %816  ;;  %864 = vmatpush1.msra.mxu1 %v828_v28  ;;  %vm3280_vm9 = vcmp.ne.s32.totalorder %v1109_v25, 7  ;;  %vm3302_vm11 = vcmp.ne.s32.totalorder %v1109_v25, 0  ;;  %v2654_v25 = vld [vmem:[%s3534_s1 + $0x250] sm:$0xff]  }
 0x452   :  { %v827_v32 = vsel %vm154_vm3, %v792_v5, %v817_v31  ;;  %2270 = vmatprep.subr.msk.mxu1 %vm2808_vm2, %v803_v12  ;;  %v2641_v5 = vld [vmem:[%s3534_s1 + $0x1f8] sm:$0xff]   ;;  %v2310_v12 = vld [vmem:[%s3535_s2 + $0x6] ss:$0 sm:$0xff] }
 0x453   :  { %866 = vmatpush1.msra.mxu1 %v827_v32  ;;  %1267 = vmatpush1.bf16.msra.mxu0 %v2641_v5  ;;  %v2650_v5 = vld [vmem:[%s3534_s1 + $0x270] sm:$0xff]  }
 0x454   :  { %867 = vmatprep.subr.mxu1 %v804_v29  ;;  %v2642_v29 = vld [vmem:[%s3534_s1 + $0x1f0] sm:$0xff]   ;;  %1268 = vmatprep.subr.bf16.mxu0 %v2711_v6 }
 0x455   :  { %868 = vmatpush1.msra.mxu1 %v826_v34 }
 0x456   :  { %2271 = vmatmul.mubr.msk.f32.vlgmr.msra.gmra.mxu1 %vm830_vm7, %v784_v55  ;;  %1016 = vmatprep.subr.bf16.mxu1 %v2711_v6 }
 0x457   :  { %907 = vmatprep.mubr.f32.mxu1 %v2713_v10  ;;  %1017 = vmatpush1.bf16.msra.mxu1 %v2613_v33 }
 0x458   :  { %1018 = vmatprep.subr.bf16.mxu1 %v2711_v6  ;;  %1269 = vmatpush1.bf16.msra.mxu0 %v2642_v29 }
 0x459   :  { %1270 = vmatprep.subr.bf16.mxu0 %v2711_v6 }
 0x45a   :  { %2272 = vmatmul.mubr.msk.f32.gmra.mxu1 %vm830_vm7, %v785_v26 }
 0x45b   :  { %1019 = vmatpush1.bf16.msra.mxu1 %v2614_v49 }
 0x45c   :  { %1020 = vmatprep.subr.bf16.mxu1 %v2711_v6  ;;  %1271 = vmatpush1.bf16.msra.mxu0 %v2643_v7 }
 0x45d   :  { %1272 = vmatprep.subr.bf16.mxu0 %v2711_v6 }
 0x45f   :  { %1021 = vmatpush1.bf16.msra.mxu1 %v2615_v35 }
 0x460   :  { %1022 = vmatprep.subr.bf16.mxu1 %v2711_v6  ;;  %1273 = vmatpush1.bf16.msra.mxu0 %v2644_v8 }
 0x461   :  { %1282 = vmatprep.subr.bf16.mxu0 %v2711_v6 }
 0x463   :  { %1023 = vmatpush1.bf16.msra.mxu1 %v2616_v36 }
 0x464   :  { %1024 = vmatprep.subr.bf16.mxu1 %v2711_v6  ;;  %1283 = vmatpush2.bf16.msra.mxu0 %v2645_v9  ;;  %v2651_v9 = vld [vmem:[%s3534_s1 + $0x268] sm:$0xff]  }
 0x465   :  { %1284 = vmatprep.subr.bf16.mxu0 %v2711_v6 }
 0x467   :  { %1025 = vmatpush1.bf16.msra.mxu1 %v2617_v39 }
 0x468   :  { %1026 = vmatprep.subr.bf16.mxu1 %v2711_v6  ;;  %1285 = vmatpush2.bf16.msra.mxu0 %v2646_v38 }
 0x469   :  { %1286 = vmatprep.subr.bf16.mxu0 %v2711_v6 }
 0x46b   :  { %1027 = vmatpush1.bf16.msra.mxu1 %v2618_v40 }
 0x46c   :  { %1028 = vmatprep.subr.bf16.mxu1 %v2711_v6  ;;  %1287 = vmatpush2.bf16.msra.mxu0 %v2647_v11 }
 0x46d   :  { %1288 = vmatprep.subr.bf16.mxu0 %v2711_v6 }
 0x46f   :  { %1029 = vmatpush1.bf16.msra.mxu1 %v2619_v41 }
 0x470   :  { %1030 = vmatprep.subr.bf16.mxu1 %v2711_v6  ;;  %1289 = vmatpush2.bf16.msra.mxu0 %v2648_v19 }
 0x471   :  { %1628 = vmatprep.subr.bf16.mxu0 %v2711_v6 }
 0x473   :  { %1031 = vmatpush1.bf16.msra.mxu1 %v2620_v42 }
 0x474   :  { %1040 = vmatprep.subr.bf16.mxu1 %v2711_v6 }
 0x477   :  { %1041 = vmatpush2.bf16.msra.mxu1 %v2621_v43 }
 0x478   :  { %1042 = vmatprep.subr.bf16.mxu1 %v2711_v6 }
 0x47b   :  { %1043 = vmatpush2.bf16.msra.mxu1 %v2622_v44 }
 0x47c   :  { %1044 = vmatprep.subr.bf16.mxu1 %v2711_v6 }
 0x47f   :  { %1045 = vmatpush2.bf16.msra.mxu1 %v2623_v45 }
 0x480   :  { %1046 = vmatprep.subr.bf16.mxu1 %v2711_v6 }
 0x483   :  { %1047 = vmatpush2.bf16.msra.mxu1 %v2624_v46 }
 0x484   :  { %1371 = vmatprep.subr.bf16.mxu1 %v2711_v6 }
 0x516   :  { %v903_v47 = vpop.f32.mrf.mxu1 }
 0x518   :  { %v905_v48 = vpop.f32.mrf.mxu1 }
 0x51a   :  { %v909_v50 = vpop.f32.mrf.mxu1 }
 0x51b   :  { %v914_v54 = vpack.c.bf16 %v909_v50, %v903_v47  ;;  %v2668_v50 = vld [vmem:[%s3534_s1 + $0x2a0] sm:$0xff]  }
 0x51c   :  { %v911_v51 = vpop.f32.mrf.mxu1 }
 0x51d   :  { %v915_v52 = vpack.c.bf16 %v911_v51, %v905_v48  ;;  %v2667_v48 = vld [vmem:[%s3534_s1 + $0x2a8] sm:$0xff]  }
 0x51f   :  { %2309 = vmatprep.mubr.msk.bf16.mxu1 %vm154_vm3, %v915_v52 }
 0x520   :  { %1049 = vmatmul.mubr.bf16.vlgmr.msra.gmra.mxu1 %v914_v54 }
 0x521   :  { %1372 = vmatpush1.bf16.msra.mxu1 %v2625_v53  ;;  %2385 = vmatprep.mubr.msk.bf16.mxu1 %vm154_vm3, %v915_v52 }
 0x522   :  { %1373 = vmatprep.subr.bf16.mxu1 %v2711_v6 }
 0x525   :  { %1374 = vmatpush1.bf16.msra.mxu1 %v2626_v56 }
 0x526   :  { %1375 = vmatprep.subr.bf16.mxu1 %v2711_v6 }
 0x529   :  { %1376 = vmatpush1.bf16.msra.mxu1 %v2627_v57 }
 0x52a   :  { %1377 = vmatprep.subr.bf16.mxu1 %v2711_v6 }
 0x52d   :  { %1378 = vmatpush1.bf16.msra.mxu1 %v2628_v58 }
 0x52e   :  { %1379 = vmatprep.subr.bf16.mxu1 %v2711_v6 }
 0x531   :  { %1380 = vmatpush1.bf16.msra.mxu1 %v2629_v59 }
 0x532   :  { %1381 = vmatprep.subr.bf16.mxu1 %v2711_v6 }
 0x535   :  { %1382 = vmatpush1.bf16.msra.mxu1 %v2630_v16 }
 0x536   :  { %1383 = vmatprep.subr.bf16.mxu1 %v2711_v6 }
 0x539   :  { %1384 = vmatpush1.bf16.msra.mxu1 %v2631_v60  ;;  %v2386_v60 = vld [vmem:[%s3535_s2 + $0x8] ss:$0 sm:$0xff] }
 0x53a   :  { %1385 = vmatprep.subr.bf16.mxu1 %v2711_v6 }
 0x53d   :  { %1386 = vmatpush1.bf16.msra.mxu1 %v2632_v61 }
 0x53e   :  { %1395 = vmatprep.subr.bf16.mxu1 %v2711_v6 }
 0x541   :  { %1396 = vmatpush2.bf16.msra.mxu1 %v2633_v62 }
 0x542   :  { %1397 = vmatprep.subr.bf16.mxu1 %v2711_v6 }
 0x545   :  { %1398 = vmatpush2.bf16.msra.mxu1 %v2634_v63  ;;  %v2387_v63 = vld [vmem:[%s3535_s2 + $0x9] ss:$0 sm:$0xff] }
 0x546   :  { %1399 = vmatprep.subr.bf16.mxu1 %v2711_v6 }
 0x549   :  { %1400 = vmatpush2.bf16.msra.mxu1 %v2635_v0 }
 0x54a   :  { %1401 = vmatprep.subr.bf16.mxu1 %v2711_v6 }
 0x54d   :  { %1402 = vmatpush2.bf16.msra.mxu1 %v2636_v1 }
 0x550   :  { %1404 = vmatmul.mubr.bf16.vlgmr.msra.gmra.mxu1 %v914_v54 }
 0x551   :  { %1519 = vmatprep.mubr.f32.mxu1 %v2713_v10 }
 0x5e0   :  { %v1050_v13 = vpop.f32.mrf.mxu1 }
 0x5e1   :  { %v1063_v17 = vmul.f32 %v2310_v12, %v1050_v13 }
 0x5e2   :  { %v1052_v20 = vpop.f32.mrf.mxu1 }
 0x5e3   :  { %v1069_v21 = vadd.f32 %v2311_v14, %v1063_v17  ;;  %v2652_v17 = vld [vmem:[%s3534_s1 + $0x260] sm:$0xff]  }
 0x5e4   :  { %v1053_v22 = vpop.f32.mrf.mxu1 }
 0x5e5   :  { %v1064_v24 = vmul.f32 %v2310_v12, %v1053_v22  ;;  %v1071_v27 = vmax.f32 %v1069_v21, 0.0 }
 0x5e6   :  { %v1055_v28 = vpop.f32.mrf.mxu1 }
 0x5e7   :  { %v1070_v31 = vadd.f32 %v2311_v14, %v1064_v24  ;;  %v1124_v37 = vrot.slane %v1071_v27, 7  ;;  %v1136_v34 = vrot.slane %v1071_v27, 1  ;;  %v2653_v24 = vld [vmem:[%s3534_s1 + $0x258] sm:$0xff]   ;;  %v2656_v28 = vld [vmem:[%s3534_s1 + $0x240] sm:$0xff]  }
 0x5e9   :  { %v1072_v32 = vmax.f32 %v1070_v31, 0.0  ;;  %v2658_v31 = vld [vmem:[%s3534_s1 + $0x290] sm:$0xff]  }
 0x5eb   :  { %v1125_v26 = vrot.slane %v1072_v32, 7  ;;  %v1137_v49 = vrot.slane %v1072_v32, 1  ;;  %v2572_v35 = vpack.i.bf16 %v1072_v32, %v1071_v27  ;;  %v2655_v27 = vld [vmem:[%s3534_s1 + $0x248] sm:$0xff]  }
 0x5ec   :  { %v2659_v32 = vld [vmem:[%s3534_s1 + $0x288] sm:$0xff]  }
 0x5ed   :  { %2573 = vrot.lane.b32.xlu0 %v2572_v35, %s2712_s15  ;;  %v1138_v18 = vsel %vm121_vm1, %v1136_v34, %v1137_v49  ;;  %v1139_v36 = vsel %vm121_vm1, %v1137_v49, %v1136_v34  ;;  %v1126_v39 = vsel %vm96_vm0, %v1124_v37, %v1125_v26  ;;  %v1127_v40 = vsel %vm96_vm0, %v1125_v26, %v1124_v37  ;;  %v1428_v35 = vld [vmem:[%s3537_s4] sm:$0xff] }
 0x5ee   :  { %v1144_v41 = vsel %vm3276_vm8, %v1138_v18, 0.0  ;;  %v1145_v42 = vsel %vm3280_vm9, %v1139_v36, 0.0  ;;  %v1132_v54 = vsel %vm3298_vm10, %v1127_v40, 0.0  ;;  %v1133_v56 = vsel %vm3302_vm11, %v1126_v39, 0.0  ;;  %v2660_v36 = vld [vmem:[%s3534_s1 + $0x280] sm:$0xff]  }
 0x5ef   :  { %v1157_v43 = vpack.c.bf16 %v1145_v42, %v1144_v41  ;;  %v2661_v42 = vld [vmem:[%s3534_s1 + $0x2d8] sm:$0xff]  }
 0x5f1   :  { %2372 = vmatprep.mubr.msk.bf16.mxu0 %vm154_vm3, %v1157_v43  ;;  %v2662_v43 = vld [vmem:[%s3534_s1 + $0x2d0] sm:$0xff]  }
 0x610   :  { %v1405_v44 = vpop.f32.mrf.mxu1 }
 0x612   :  { %v1407_v45 = vpop.f32.mrf.mxu1 }
 0x613   :  { %v2664_v45 = vld [vmem:[%s3534_s1 + $0x2c0] sm:$0xff]  }
 0x614   :  { %v1408_v46 = vpop.f32.mrf.mxu1 }
 0x616   :  { %v1410_v47 = vpop.f32.mrf.mxu1 }
 0x617   :  { %v2666_v47 = vld [vmem:[%s3534_s1 + $0x2b0] sm:$0xff]  }
 0x65f   :  { %v2574_v51 = vpop.permute.xlu0 %2573 }
 0x660   :  { %v2576_v52 = vunpack.i.h.bf16 %v2574_v51  ;;  %v2575_v53 = vunpack.i.l.bf16 %v2574_v51  ;;  %v2669_v51 = vld [vmem:[%s3534_s1 + $0x2f8] sm:$0xff]  }
 0x662   :  { %v1154_v57 = vsel %vm154_vm3, %v1132_v54, %v2575_v53  ;;  %v1155_v58 = vsel %vm154_vm3, %v1133_v56, %v2576_v52  ;;  %v2670_v52 = vld [vmem:[%s3534_s1 + $0x2f0] sm:$0xff]   ;;  %v2671_v53 = vld [vmem:[%s3534_s1 + $0x2e8] sm:$0xff]   ;;  %v2672_v54 = vld [vmem:[%s3534_s1 + $0x2e0] sm:$0xff]  }
 0x663   :  { %v1156_v59 = vpack.c.bf16 %v1155_v58, %v1154_v57  ;;  %v2673_v56 = vld [vmem:[%s3534_s1 + $0x338] sm:$0xff]   ;;  %v2674_v57 = vld [vmem:[%s3534_s1 + $0x330] sm:$0xff]   ;;  %v2675_v58 = vld [vmem:[%s3534_s1 + $0x328] sm:$0xff]  }
 0x665   :  { %1291 = vmatmul.mubr.bf16.vlgmr.msra.gmra.mxu0 %v1156_v59  ;;  %v2676_v59 = vld [vmem:[%s3534_s1 + $0x320] sm:$0xff]  }
 0x666   :  { %1629 = vmatpush1.bf16.msra.mxu0 %v2649_v2  ;;  %v2684_v2 = vld [vmem:[%s3534_s1 + $0x340] sm:$0xff]  }
 0x667   :  { %1630 = vmatprep.subr.bf16.mxu0 %v2711_v6 }
 0x66a   :  { %1631 = vmatpush1.bf16.msra.mxu0 %v2650_v5 }
 0x66b   :  { %1632 = vmatprep.subr.bf16.mxu0 %v2711_v6 }
 0x66e   :  { %1633 = vmatpush1.bf16.msra.mxu0 %v2651_v9 }
 0x66f   :  { %1634 = vmatprep.subr.bf16.mxu0 %v2711_v6 }
 0x672   :  { %1635 = vmatpush1.bf16.msra.mxu0 %v2652_v17 }
 0x673   :  { %1636 = vmatprep.subr.bf16.mxu0 %v2711_v6 }
 0x676   :  { %1637 = vmatpush1.bf16.msra.mxu0 %v2653_v24 }
 0x677   :  { %1638 = vmatprep.subr.bf16.mxu0 %v2711_v6 }
 0x67a   :  { %1639 = vmatpush1.bf16.msra.mxu0 %v2654_v25 }
 0x67b   :  { %1640 = vmatprep.subr.bf16.mxu0 %v2711_v6 }
 0x67e   :  { %1641 = vmatpush1.bf16.msra.mxu0 %v2655_v27 }
 0x67f   :  { %1642 = vmatprep.subr.bf16.mxu0 %v2711_v6 }
 0x682   :  { %1643 = vmatpush1.bf16.msra.mxu0 %v2656_v28  ;;  %v2504_v28 = vld [vmem:[%s3535_s2 + $0xc] ss:$0 sm:$0xff] }
 0x683   :  { %1652 = vmatprep.subr.bf16.mxu0 %v2711_v6 }
 0x686   :  { %1653 = vmatpush2.bf16.msra.mxu0 %v2657_v30 }
 0x687   :  { %1654 = vmatprep.subr.bf16.mxu0 %v2711_v6 }
 0x68a   :  { %1655 = vmatpush2.bf16.msra.mxu0 %v2658_v31  ;;  %v2505_v31 = vld [vmem:[%s3535_s2 + $0xd] ss:$0 sm:$0xff] }
 0x68b   :  { %1656 = vmatprep.subr.bf16.mxu0 %v2711_v6 }
 0x68e   :  { %1657 = vmatpush2.bf16.msra.mxu0 %v2659_v32 }
 0x68f   :  { %1658 = vmatprep.subr.bf16.mxu0 %v2711_v6 }
 0x692   :  { %1659 = vmatpush2.bf16.msra.mxu0 %v2660_v36  ;;  %v2686_v36 = vld [vmem:[%s3539_s6 + $0x10] sm:$0xff]  }
 0x693   :  { %1947 = vmatprep.subr.bf16.mxu0 %v2711_v6 }
 0x725   :  { %v1292_v16 = vpop.f32.mrf.mxu0 }
 0x726   :  { %v1406_v61 = vadd.f32 %v1405_v44, %v1292_v16  ;;  %v2663_v44 = vld [vmem:[%s3534_s1 + $0x2c8] sm:$0xff]   ;;  %v2677_v16 = vld [vmem:[%s3534_s1 + $0x318] sm:$0xff]  }
 0x727   :  { %v1294_v62 = vpop.f32.mrf.mxu0 }
 0x728   :  { %v1418_v0 = vmul.f32 %v2386_v60, %v1406_v61  ;;  %v2679_v61 = vld [vmem:[%s3534_s1 + $0x308] sm:$0xff]   ;;  %v2680_v62 = vld [vmem:[%s3534_s1 + $0x300] sm:$0xff]  }
 0x729   :  { %v1295_v1 = vpop.f32.mrf.mxu0 }
 0x72a   :  { %v1409_v23 = vadd.f32 %v1408_v46, %v1295_v1  ;;  %v1424_v3 = vadd.f32 %v2387_v63, %v1418_v0  ;;  %v2665_v46 = vld [vmem:[%s3534_s1 + $0x2b8] sm:$0xff]   ;;  %v2682_v0 = vld [vmem:[%s3534_s1 + $0x350] sm:$0xff]   ;;  %v2683_v1 = vld [vmem:[%s3534_s1 + $0x348] sm:$0xff]  }
 0x72b   :  { %v1297_v4 = vpop.f32.mrf.mxu0 }
 0x72c   :  { %v1419_v29 = vmul.f32 %v2386_v60, %v1409_v23  ;;  %v1426_v7 = vmax.f32 %v1424_v3, 0.0  ;;  %v2678_v60 = vld [vmem:[%s3534_s1 + $0x310] sm:$0xff]   ;;  %v2428_v23 = vld [vmem:[%s3535_s2 + $0xa] ss:$0 sm:$0xff]  ;;  %v2429_v4 = vld [vmem:[%s3535_s2 + $0xb] ss:$0 sm:$0xff] }
 0x72e   :  { %1443 = vrot.lane.b32.xlu0 %v1426_v7, %s2712_s15  ;;  %v1425_v8 = vadd.f32 %v2387_v63, %v1419_v29  ;;  %v1429_v11 = vrot.slane %v1426_v7, 7  ;;  %v1435_v13 = vrot.slane %v1426_v7, 1  ;;  %v2681_v63 = vld [vmem:[%s3534_s1 + $0x358] sm:$0xff]  }
 0x730   :  { %v1427_v38 = vmax.f32 %v1425_v8, 0.0 }
 0x732   :  { %1445 = vrot.lane.b32.xlu1 %v1427_v38, %s2712_s15  ;;  %v1430_v12 = vrot.slane %v1427_v38, 7  ;;  %v1436_v14 = vrot.slane %v1427_v38, 1 }
 0x734   :  { %v1438_v19 = vsel %vm121_vm1, %v1436_v14, %v1435_v13  ;;  %v1432_v20 = vsel %vm96_vm0, %v1430_v12, %v1429_v11  ;;  %v1431_v21 = vsel %vm96_vm0, %v1429_v11, %v1430_v12  ;;  %v1437_v22 = vsel %vm121_vm1, %v1435_v13, %v1436_v14 }
 0x735   :  { %2388 = vmatprep.subr.msk.mxu1 %vm3280_vm9, %v1438_v19  ;;  %v1434_v34 = vsel %vm3302_vm11, %v1431_v21, 0.0  ;;  %v1433_v49 = vsel %vm3298_vm10, %v1432_v20, 0.0  ;;  %vm2001_vm0 = vcmask 64512  }
 0x7a0   :  { %v1444_v37 = vpop.permute.xlu0 %1443 }
 0x7a1   :  { %v1449_v18 = vsel %vm154_vm3, %v1433_v49, %v1444_v37 }
 0x7a4   :  { %v1446_v33 = vpop.permute.xlu1 %1445 }
 0x7a5   :  { %v1450_v26 = vsel %vm154_vm3, %v1434_v34, %v1446_v33 }
 0x7a6   :  { %1484 = vmatpush1.msra.mxu1 %v1450_v26 }
 0x7a7   :  { %2389 = vmatprep.subr.msk.mxu1 %vm3276_vm8, %v1437_v22 }
 0x7a8   :  { %1486 = vmatpush1.msra.mxu1 %v1449_v18  ;;  %v2685_v18 = vld [vmem:[%s3539_s6 + $0x18] sm:$0xff]  }
 0x7a9   :  { %2390 = vmatmul.mubr.msk.f32.vlgmr.msra.gmra.mxu1 %vm1451_vm12, %v1428_v35  ;;  %1835 = vmatprep.subr.bf16.mxu1 %v2711_v6  ;;  %v2000_v35 = vld [vmem:[%s3538_s5] sm:$0x3] }
 0x7aa   :  { %1836 = vmatpush1.bf16.msra.mxu1 %v2673_v56 }
 0x7ab   :  { %1837 = vmatprep.subr.bf16.mxu1 %v2711_v6 }
 0x7ae   :  { %1838 = vmatpush1.bf16.msra.mxu1 %v2674_v57 }
 0x7af   :  { %1839 = vmatprep.subr.bf16.mxu1 %v2711_v6 }
 0x7b2   :  { %1840 = vmatpush1.bf16.msra.mxu1 %v2675_v58 }
 0x7b3   :  { %1841 = vmatprep.subr.bf16.mxu1 %v2711_v6 }
 0x7b6   :  { %1842 = vmatpush1.bf16.msra.mxu1 %v2676_v59 }
 0x7b7   :  { %1843 = vmatprep.subr.bf16.mxu1 %v2711_v6 }
 0x7ba   :  { %1844 = vmatpush1.bf16.msra.mxu1 %v2677_v16 }
 0x7bb   :  { %1845 = vmatprep.subr.bf16.mxu1 %v2711_v6 }
 0x7be   :  { %1846 = vmatpush1.bf16.msra.mxu1 %v2678_v60 }
 0x7bf   :  { %1847 = vmatprep.subr.bf16.mxu1 %v2711_v6 }
 0x7c2   :  { %1848 = vmatpush1.bf16.msra.mxu1 %v2679_v61 }
 0x7c3   :  { %1849 = vmatprep.subr.bf16.mxu1 %v2711_v6 }
 0x7c6   :  { %1850 = vmatpush1.bf16.msra.mxu1 %v2680_v62 }
 0x7c7   :  { %1859 = vmatprep.subr.bf16.mxu1 %v2711_v6 }
 0x7ca   :  { %1860 = vmatpush2.bf16.msra.mxu1 %v2681_v63 }
 0x7cb   :  { %1861 = vmatprep.subr.bf16.mxu1 %v2711_v6 }
 0x7ce   :  { %1862 = vmatpush2.bf16.msra.mxu1 %v2682_v0 }
 0x7cf   :  { %1863 = vmatprep.subr.bf16.mxu1 %v2711_v6 }
 0x7d2   :  { %1864 = vmatpush2.bf16.msra.mxu1 %v2683_v1 }
 0x7d3   :  { %1865 = vmatprep.subr.bf16.mxu1 %v2711_v6 }
 0x7d6   :  { %1866 = vmatpush2.bf16.msra.mxu1 %v2684_v2 }
 0x7d7   :  { %2520 = vmatprep.subr.mxu1 %v2713_v10 }
 0x869   :  { %v1521_v39 = vpop.f32.mrf.mxu1 }
 0x86a   :  { %v1526_v55 = vpack.c.bf16 %v1521_v39, %v1521_v39  ;;  %v2687_v39 = vld [vmem:[%s3539_s6 + $0x8] sm:$0xff]  }
 0x86b   :  { %v1523_v40 = vpop.f32.mrf.mxu1 }
 0x86c   :  { %v1527_v41 = vpack.c.bf16 %v1523_v40, %v1523_v40  ;;  %v2688_v40 = vld [vmem:[%s3539_s6] sm:$0xff]  }
 0x86e   :  { %2427 = vmatprep.mubr.msk.bf16.mxu0 %vm154_vm3, %v1527_v41 }
 0x86f   :  { %1661 = vmatmul.mubr.bf16.vlgmr.msra.gmra.mxu0 %v1526_v55 }
 0x870   :  { %1948 = vmatpush1.bf16.msra.mxu0 %v2661_v42  ;;  %2503 = vmatprep.mubr.msk.bf16.mxu0 %vm154_vm3, %v1527_v41 }
 0x871   :  { %1949 = vmatprep.subr.bf16.mxu0 %v2711_v6 }
 0x874   :  { %1950 = vmatpush1.bf16.msra.mxu0 %v2662_v43  ;;  %v2507_v43 = vld [vmem:[%s3540_s7] ss:$0 sm:$0xff] }
 0x875   :  { %1951 = vmatprep.subr.bf16.mxu0 %v2711_v6 }
 0x878   :  { %1952 = vmatpush1.bf16.msra.mxu0 %v2663_v44 }
 0x879   :  { %1953 = vmatprep.subr.bf16.mxu0 %v2711_v6 }
 0x87c   :  { %1954 = vmatpush1.bf16.msra.mxu0 %v2664_v45 }
 0x87d   :  { %1955 = vmatprep.subr.bf16.mxu0 %v2711_v6 }
 0x880   :  { %1956 = vmatpush1.bf16.msra.mxu0 %v2665_v46 }
 0x881   :  { %1957 = vmatprep.subr.bf16.mxu0 %v2711_v6 }
 0x884   :  { %1958 = vmatpush1.bf16.msra.mxu0 %v2666_v47 }
 0x885   :  { %1959 = vmatprep.subr.bf16.mxu0 %v2711_v6 }
 0x888   :  { %1960 = vmatpush1.bf16.msra.mxu0 %v2667_v48 }
 0x889   :  { %1961 = vmatprep.subr.bf16.mxu0 %v2711_v6 }
 0x88c   :  { %1962 = vmatpush1.bf16.msra.mxu0 %v2668_v50 }
 0x88d   :  { %1971 = vmatprep.subr.bf16.mxu0 %v2711_v6 }
 0x890   :  { %1972 = vmatpush2.bf16.msra.mxu0 %v2669_v51 }
 0x891   :  { %1973 = vmatprep.subr.bf16.mxu0 %v2711_v6 }
 0x894   :  { %1974 = vmatpush2.bf16.msra.mxu0 %v2670_v52 }
 0x895   :  { %1975 = vmatprep.subr.bf16.mxu0 %v2711_v6 }
 0x898   :  { %1976 = vmatpush2.bf16.msra.mxu0 %v2671_v53 }
 0x899   :  { %1977 = vmatprep.subr.bf16.mxu0 %v2711_v6  ;;  %v1710_v6 = vand.u32 3, %v2782_v15 }
 0x89b   :  { %vm1723_vm13 = vcmp.ne.s32.totalorder %v1710_v6, 3  ;;  %vm1718_vm14 = vcmp.ne.s32.totalorder %v1710_v6, 0 }
 0x89c   :  { %1978 = vmatpush2.bf16.msra.mxu0 %v2672_v54 }
 0x89f   :  { %1980 = vmatmul.mubr.bf16.vlgmr.msra.gmra.mxu0 %v1526_v55 }
 0x92f   :  { %v1662_v3 = vpop.f32.mrf.mxu0 }
 0x930   :  { %v1674_v5 = vmul.f32 %v2428_v23, %v1662_v3 }
 0x931   :  { %v1664_v29 = vpop.f32.mrf.mxu0 }
 0x932   :  { %v1679_v7 = vadd.f32 %v2429_v4, %v1674_v5 }
 0x933   :  { %v1665_v8 = vpop.f32.mrf.mxu0 }
 0x934   :  { %v1680_v9 = vmax.f32 %v1679_v7, 0.0 }
 0x935   :  { %v1666_v38 = vpop.f32.mrf.mxu0 }
 0x936   :  { %v1724_v11 = vrot.slane %v1680_v9, 1  ;;  %1729 = vrot.lane.b32.xlu1 %v1680_v9, %s2712_s15  ;;  %v1719_v12 = vrot.slane %v1680_v9, 7 }
 0x938   :  { %v1727_v13 = vsel %vm1723_vm13, %v1724_v11, 0.0  ;;  %v1722_v14 = vsel %vm1718_vm14, %v1719_v12, 0.0 }
 0x939   :  { %v1734_v17 = vpack.c.bf16 %v1727_v13, %v1727_v13 }
 0x93b   :  { %2490 = vmatprep.mubr.msk.bf16.mxu1 %vm154_vm3, %v1734_v17 }
 0x95f   :  { %v1981_v19 = vpop.f32.mrf.mxu0 }
 0x961   :  { %v1983_v20 = vpop.f32.mrf.mxu0 }
 0x963   :  { %v1984_v21 = vpop.f32.mrf.mxu0 }
 0x965   :  { %v1985_v22 = vpop.f32.mrf.mxu0 }
 0x9a8   :  { %v1730_v15 = vpop.permute.xlu1 %1729 }
 0x9a9   :  { %v1732_v24 = vsel %vm154_vm3, %v1722_v14, %v1730_v15 }
 0x9aa   :  { %v1733_v25 = vpack.c.bf16 %v1732_v24, %v1732_v24 }
 0x9ac   :  { %1868 = vmatmul.mubr.bf16.vlgmr.msra.gmra.mxu1 %v1733_v25 }
 0x9ad   :  { %2522 = vmatprep.mubr.msk.f32.mxu1 %vm2714_vm15, %v2713_v10 }
 0xa6c   :  { %v1869_v27 = vpop.f32.mrf.mxu1 }
 0xa6d   :  { %v1982_v30 = vadd.f32 %v1981_v19, %v1869_v27 }
 0xa6e   :  { %v1871_v32 = vpop.f32.mrf.mxu1 }
 0xa6f   :  { %v1993_v37 = vmul.f32 %v2504_v28, %v1982_v30 }
 0xa70   :  { %v1872_v33 = vpop.f32.mrf.mxu1 }
 0xa71   :  { %v1998_v34 = vadd.f32 %v2505_v31, %v1993_v37 }
 0xa72   :  { %v1873_v26 = vpop.f32.mrf.mxu1 }
 0xa73   :  { %v1999_v49 = vmax.f32 %v1998_v34, 0.0 }
 0xa75   :  { %2521 = vmatpush3.msra.mxu1 %v1999_v49 }
 0xa76   :  { %2523 = vmatmul.mubr.msk.f32.vlgmr.msra.gmra.mxu1 %vm2001_vm0, %v2000_v35  ;;  %2525 = vmatprep.subr.bf16.mxu1 %v2713_v10 }
 0xa77   :  { %2526 = vmatpush3.bf16.msra.mxu1 %v2685_v18  ;;  %2533 = vmatprep.mubr.msk.bf16.mxu1 %vm2714_vm15, %v2713_v10 }
 0xa78   :  { %2527 = vmatprep.subr.bf16.mxu1 %v2713_v10 }
 0xa7b   :  { %2528 = vmatpush3.bf16.msra.mxu1 %v2686_v36 }
 0xa7c   :  { %2529 = vmatprep.subr.bf16.mxu1 %v2713_v10 }
 0xa7f   :  { %2530 = vmatpush3.bf16.msra.mxu1 %v2687_v39 }
 0xa80   :  { %2531 = vmatprep.subr.bf16.mxu1 %v2713_v10 }
 0xa83   :  { %2532 = vmatpush3.bf16.msra.mxu1 %v2688_v40 }
 0xb36   :  { %v2071_v41 = vpop.f32.mrf.mxu1 }
 0xb37   :  { %v2075_v42 = vpack.c.bf16 %v2071_v41, %v2071_v41 }
 0xb38   :  { %v2524_v55 = vpop.f32.mrf.mxu1 }
 0xb39   :  { %2534 = vmatmul.mubr.msk.bf16.vlgmr.msra.gmra.mxu1 %vm154_vm3, %v2075_v42 }
 0xbf9   :  { %v2152_v44 = vpop.f32.mrf.mxu1 }
 0xbfa   :  { %v2153_v45 = vadd.f32 %v2507_v43, %v2152_v44 }
 0xbfb   :  { %v2535_v10 = vpop.f32.mrf.mxu1 }
 0xbfc   :  { %2158 = vst [vmem:[#allocation2] sm:$0x3] %v2153_v45 }
 0xbfd   :  { %v2155_v46 = vpop.f32.mrf.mxu1 }
 0xbfe   :  { %2700 = shalt.err (!%p2697_p4)
}
 0xbff   :  { %2168 = dma.vmem_to_hbm [thread:$0]  %s2166_s20, 32, %s3541_s8, [#allocation3]   ;;  %v2536_v47 = vpop.f32.mrf.mxu1 }
 0xc00   :  { %2709 = dma.done.wait [#allocation3], 32  }
 0xc01   :  { %2710 = vsyncadd [#allocation3], 4294967264 }
 0xc02   :  { %2172 = vsyncpa [#allocation3], 1 }

</bundles_post_ra>
